<compile_context>
chip_gen: v7x
topology: tpu7x:2x2x1
jax: 0.10.0
libtpu: 0.0.40
codegen_flags: <defaults>
</compile_context>

<pallas_src>
import jax
import jax.numpy as jnp
from jax.experimental import pallas as pl
from jax.experimental.pallas import tpu as pltpu


def _round_up(x, m):
    return (x + m - 1) // m * m


def _pick_batch_tile(batch, *, max_tb=2048, min_tb=256):
    """Adaptive batch tile: big enough to amortize per-step overhead, and an
    even number of grid steps (>=2) whenever the batch allows it, so both
    v7x TensorCores stay busy/balanced under dimension_semantics=parallel."""
    if batch <= min_tb:
        return min_tb                      # single grid step
    n_steps = max(pl.cdiv(batch, max_tb), 2)
    if n_steps % 2:                        # balance across 2 TensorCores
        n_steps += 1
    return min(max_tb, _round_up(pl.cdiv(batch, n_steps), 8))


def actor_kernel(x_ref, w1_ref, b1_ref, w2_ref, b2_ref, w3_ref, b3_ref, o_ref):
    # x tile: (TB, 8) f32 -> bf16 for the MXU; all dots accumulate in f32.
    x = x_ref[...].astype(jnp.bfloat16)

    # Layer 1.  Bias add / ReLU in f32 (portable to v5e which has no bf16
    # VPU); the bf16 downcast is fused into the same elementwise pass so the
    # (TB, 256) intermediate lives as bf16 (half the vreg/VMEM footprint).
    h1 = jnp.dot(x, w1_ref[...], preferred_element_type=jnp.float32)
    h1 = jnp.maximum(h1 + b1_ref[...], 0.0).astype(jnp.bfloat16)

    # Layer 2.
    h2 = jnp.dot(h1, w2_ref[...], preferred_element_type=jnp.float32)
    h2 = jnp.maximum(h2 + b2_ref[...], 0.0).astype(jnp.bfloat16)

    # Layer 3 + tanh in f32.
    mu = jnp.dot(h2, w3_ref[...], preferred_element_type=jnp.float32) + b3_ref[...]
    o_ref[...] = jnp.tanh(mu).astype(o_ref.dtype)


def actor_forward(x, params, *, max_tb=2048):
    """x: (B, 8) float32 -> mu: (B, 2) float32.

    `params` should come from prepare_params() (bf16 weights, f32 biases);
    f32 weights are also accepted (cast at trace time)."""
    w1, b1, w2, b2, w3, b3 = params
    B, in_dim = x.shape
    h1_dim = w1.shape[1]
    h2_dim = w2.shape[1]
    out_dim = w3.shape[1]

    # Hoisted bf16 cast: no-op when params were prepared once up front.
    if w1.dtype != jnp.bfloat16:
        w1 = w1.astype(jnp.bfloat16)
    if w2.dtype != jnp.bfloat16:
        w2 = w2.astype(jnp.bfloat16)
    if w3.dtype != jnp.bfloat16:
        w3 = w3.astype(jnp.bfloat16)

    tb = _pick_batch_tile(B, max_tb=max_tb)
    grid = (pl.cdiv(B, tb),)

    flops = 2 * B * (in_dim * h1_dim + h1_dim * h2_dim + h2_dim * out_dim)
    transcendentals = B * out_dim  # tanh
    bytes_accessed = (
        B * in_dim * 4                              # x read (f32)
        + B * out_dim * 4                           # output write (f32)
        + (w1.size + w2.size + w3.size) * 2         # bf16 weights
        + (b1.size + b2.size + b3.size) * 4         # f32 biases
    )

    return pl.pallas_call(
        actor_kernel,
        out_shape=jax.ShapeDtypeStruct((B, out_dim), jnp.float32),
        grid_spec=pltpu.PrefetchScalarGridSpec(
            num_scalar_prefetch=0,
            grid=grid,
            in_specs=[
                # batch-tiled activation input (auto double-buffered)
                pl.BlockSpec((tb, in_dim), lambda i: (i, 0)),
                # weights / biases: full-array blocks, constant index map
                # -> VMEM-resident across all grid steps.
                pl.BlockSpec(w1.shape, lambda i: (0, 0)),
                pl.BlockSpec(b1.shape, lambda i: (0, 0)),
                pl.BlockSpec(w2.shape, lambda i: (0, 0)),
                pl.BlockSpec(b2.shape, lambda i: (0, 0)),
                pl.BlockSpec(w3.shape, lambda i: (0, 0)),
                pl.BlockSpec(b3.shape, lambda i: (0, 0)),
            ],
            out_specs=pl.BlockSpec((tb, out_dim), lambda i: (i, 0)),
        ),
        compiler_params=pltpu.CompilerParams(
            # batch axis is independent -> shard across v7x's 2 TensorCores
            dimension_semantics=("parallel",),
        ),
        cost_estimate=pl.CostEstimate(
            flops=flops,
            transcendentals=transcendentals,
            bytes_accessed=bytes_accessed,
        ),
    )(x, w1, b1, w2, b2, w3, b3)


def init_params(key):
    """Deterministic parameter init mirroring nn.Linear default
    (uniform +/- 1/sqrt(fan_in)).  Weights stored as (in, out)."""
    dims = [(8, 256), (256, 256), (256, 2)]
    params = []
    for fan_in, fan_out in dims:
        kw, kb, key = jax.random.split(key, 3)
        bound = 1.0 / jnp.sqrt(float(fan_in))
        w = jax.random.uniform(kw, (fan_in, fan_out), jnp.float32, -bound, bound)
        b = jax.random.uniform(kb, (1, fan_out), jnp.float32, -bound, bound)
        params.extend([w, b])
    return tuple(params)


def prepare_params(params):
    """One-time, out-of-the-hot-path cast of weights to bf16 (biases stay f32)."""
    w1, b1, w2, b2, w3, b3 = params
    return (
        w1.astype(jnp.bfloat16), b1,
        w2.astype(jnp.bfloat16), b2,
        w3.astype(jnp.bfloat16), b3,
    )


def reference_forward(x, params):
    """Pure-JAX f32 reference (PyTorch-equivalent math)."""
    w1, b1, w2, b2, w3, b3 = params
    h1 = jnp.maximum(x @ w1 + b1, 0.0)
    h2 = jnp.maximum(h1 @ w2 + b2, 0.0)
    return jnp.tanh(h2 @ w3 + b3)


if __name__ == "__main__":
    key = jax.random.PRNGKey(0)
    pkey, xkey1, xkey2 = jax.random.split(key, 3)
    params_f32 = init_params(pkey)
    params = prepare_params(params_f32)   # bf16 weight cast hoisted out of the call path

    # Small-batch check (single grid step, partial tile with masked writeback).
    x_small = jax.random.normal(xkey1, (2, 8), jnp.float32)
    mu_small = actor_forward(x_small, params)
    jax.block_until_ready(mu_small)
    ref_small = reference_forward(x_small, params_f32)
    assert mu_small.shape == (2, 2)
    assert jnp.all(jnp.isfinite(mu_small))
    # bf16 MXU operands with f32 accumulation -> loose tolerance vs f32 reference
    assert jnp.allclose(mu_small, ref_small, atol=5e-2, rtol=5e-2), "small-batch mismatch"

    # Multi-tile check: adaptive tb gives a 2-step grid with a ragged last
    # tile (exercises pipelined batch tiling + masked partial-tile writeback,
    # and the even-grid megacore path).
    x_big = jax.random.normal(xkey2, (515, 8), jnp.float32)
    mu_big = actor_forward(x_big, params)
    jax.block_until_ready(mu_big)
    ref_big = reference_forward(x_big, params_f32)
    assert mu_big.shape == (515, 2)
    assert jnp.all(jnp.isfinite(mu_big))
    assert jnp.allclose(mu_big, ref_big, atol=5e-2, rtol=5e-2), "multi-tile mismatch"

    print("KERNEL_OK")
</pallas_src>

<mosaic_0001>
module attributes {stable_mosaic.version = 11 : i64} {
  func.func @actor_kernel(%arg0: i32, %arg1: memref<256x8xf32, #tpu.memory_space<vmem>>, %arg2: memref<8x256xbf16, #tpu.memory_space<vmem>>, %arg3: memref<1x256xf32, #tpu.memory_space<vmem>>, %arg4: memref<256x256xbf16, #tpu.memory_space<vmem>>, %arg5: memref<1x256xf32, #tpu.memory_space<vmem>>, %arg6: memref<256x2xbf16, #tpu.memory_space<vmem>>, %arg7: memref<1x2xf32, #tpu.memory_space<vmem>>, %arg8: memref<256x2xf32, #tpu.memory_space<vmem>>) attributes {dimension_semantics = [#tpu.dimension_semantics<parallel>], iteration_bounds = array<i64: 1>, scalar_prefetch = 0 : i64, scratch_operands = 0 : i64, tpu.core_type = #tpu.core_type<tc>, window_params = [{transform_indices = @transform_0, window_bounds = array<i64: 256, 8>}, {pipeline_mode = #tpu.pipeline_mode<synchronous>, transform_indices = @transform_1, window_bounds = array<i64: 8, 256>}, {pipeline_mode = #tpu.pipeline_mode<synchronous>, transform_indices = @transform_2, window_bounds = array<i64: 1, 256>}, {pipeline_mode = #tpu.pipeline_mode<synchronous>, transform_indices = @transform_3, window_bounds = array<i64: 256, 256>}, {pipeline_mode = #tpu.pipeline_mode<synchronous>, transform_indices = @transform_4, window_bounds = array<i64: 1, 256>}, {pipeline_mode = #tpu.pipeline_mode<synchronous>, transform_indices = @transform_5, window_bounds = array<i64: 256, 2>}, {pipeline_mode = #tpu.pipeline_mode<synchronous>, transform_indices = @transform_6, window_bounds = array<i64: 1, 2>}, {transform_indices = @transform_7, window_bounds = array<i64: 256, 2>}]} {
    %c0 = arith.constant 0 : index
    %c0_0 = arith.constant 0 : index
    %0 = vector.load %arg1[%c0, %c0_0] : memref<256x8xf32, #tpu.memory_space<vmem>>, vector<256x8xf32>
    %1 = arith.truncf %0 : vector<256x8xf32> to vector<256x8xbf16>
    %c0_1 = arith.constant 0 : index
    %c0_2 = arith.constant 0 : index
    %2 = vector.load %arg2[%c0_1, %c0_2] : memref<8x256xbf16, #tpu.memory_space<vmem>>, vector<8x256xbf16>
    %cst = arith.constant dense<0.000000e+00> : vector<256x256xf32>
    %3 = tpu.matmul %1, %2, %cst {dimension_numbers = #tpu.dot_dimension_numbers<[1], [0], [0], [1], [0, 0, 1, 1], [], []>} : vector<256x8xbf16>, vector<8x256xbf16>, vector<256x256xf32> -> vector<256x256xf32>
    %c0_3 = arith.constant 0 : index
    %c0_4 = arith.constant 0 : index
    %4 = vector.load %arg3[%c0_3, %c0_4] : memref<1x256xf32, #tpu.memory_space<vmem>>, vector<1x256xf32>
    %5 = vector.broadcast %4 : vector<1x256xf32> to vector<256x256xf32>
    %6 = arith.addf %3, %5 : vector<256x256xf32>
    %cst_5 = arith.constant 0.000000e+00 : f32
    %7 = vector.broadcast %cst_5 : f32 to vector<256x256xf32>
    %8 = arith.maximumf %6, %7 : vector<256x256xf32>
    %9 = arith.truncf %8 : vector<256x256xf32> to vector<256x256xbf16>
    %c0_6 = arith.constant 0 : index
    %c0_7 = arith.constant 0 : index
    %10 = vector.load %arg4[%c0_6, %c0_7] : memref<256x256xbf16, #tpu.memory_space<vmem>>, vector<256x256xbf16>
    %cst_8 = arith.constant dense<0.000000e+00> : vector<256x256xf32>
    %11 = tpu.matmul %9, %10, %cst_8 {dimension_numbers = #tpu.dot_dimension_numbers<[1], [0], [0], [1], [0, 0, 1, 1], [], []>} : vector<256x256xbf16>, vector<256x256xbf16>, vector<256x256xf32> -> vector<256x256xf32>
    %c0_9 = arith.constant 0 : index
    %c0_10 = arith.constant 0 : index
    %12 = vector.load %arg5[%c0_9, %c0_10] : memref<1x256xf32, #tpu.memory_space<vmem>>, vector<1x256xf32>
    %13 = vector.broadcast %12 : vector<1x256xf32> to vector<256x256xf32>
    %14 = arith.addf %11, %13 : vector<256x256xf32>
    %cst_11 = arith.constant 0.000000e+00 : f32
    %15 = vector.broadcast %cst_11 : f32 to vector<256x256xf32>
    %16 = arith.maximumf %14, %15 : vector<256x256xf32>
    %17 = arith.truncf %16 : vector<256x256xf32> to vector<256x256xbf16>
    %c0_12 = arith.constant 0 : index
    %c0_13 = arith.constant 0 : index
    %18 = vector.load %arg6[%c0_12, %c0_13] : memref<256x2xbf16, #tpu.memory_space<vmem>>, vector<256x2xbf16>
    %cst_14 = arith.constant dense<0.000000e+00> : vector<256x2xf32>
    %19 = tpu.matmul %17, %18, %cst_14 {dimension_numbers = #tpu.dot_dimension_numbers<[1], [0], [0], [1], [0, 0, 1, 1], [], []>} : vector<256x256xbf16>, vector<256x2xbf16>, vector<256x2xf32> -> vector<256x2xf32>
    %c0_15 = arith.constant 0 : index
    %c0_16 = arith.constant 0 : index
    %20 = vector.load %arg7[%c0_15, %c0_16] : memref<1x2xf32, #tpu.memory_space<vmem>>, vector<1x2xf32>
    %21 = vector.broadcast %20 : vector<1x2xf32> to vector<256x2xf32>
    %22 = arith.addf %19, %21 : vector<256x2xf32>
    %23 = math.tanh %22 : vector<256x2xf32>
    %c0_17 = arith.constant 0 : index
    %c0_18 = arith.constant 0 : index
    %24 = vector.load %arg8[%c0_17, %c0_18] : memref<256x2xf32, #tpu.memory_space<vmem>>, vector<256x2xf32>
    tpu.vector_store %arg8[%c0_17, %c0_18], %23 {strides = array<i32>} : memref<256x2xf32, #tpu.memory_space<vmem>>, vector<256x2xf32>,
    return
  }
  func.func @transform_0(%arg0: i32) -> (i32, i32) {
    %c0_i32 = arith.constant 0 : i32
    %c0_i32_0 = arith.constant 0 : i32
    return %arg0, %c0_i32 : i32, i32
  }
  func.func @transform_1(%arg0: i32) -> (i32, i32) {
    %c0_i32 = arith.constant 0 : i32
    %c0_i32_0 = arith.constant 0 : i32
    %c0_i32_1 = arith.constant 0 : i32
    return %c0_i32, %c0_i32_0 : i32, i32
  }
  func.func @transform_2(%arg0: i32) -> (i32, i32) {
    %c0_i32 = arith.constant 0 : i32
    %c0_i32_0 = arith.constant 0 : i32
    %c0_i32_1 = arith.constant 0 : i32
    return %c0_i32, %c0_i32_0 : i32, i32
  }
  func.func @transform_3(%arg0: i32) -> (i32, i32) {
    %c0_i32 = arith.constant 0 : i32
    %c0_i32_0 = arith.constant 0 : i32
    %c0_i32_1 = arith.constant 0 : i32
    return %c0_i32, %c0_i32_0 : i32, i32
  }
  func.func @transform_4(%arg0: i32) -> (i32, i32) {
    %c0_i32 = arith.constant 0 : i32
    %c0_i32_0 = arith.constant 0 : i32
    %c0_i32_1 = arith.constant 0 : i32
    return %c0_i32, %c0_i32_0 : i32, i32
  }
  func.func @transform_5(%arg0: i32) -> (i32, i32) {
    %c0_i32 = arith.constant 0 : i32
    %c0_i32_0 = arith.constant 0 : i32
    %c0_i32_1 = arith.constant 0 : i32
    return %c0_i32, %c0_i32_0 : i32, i32
  }
  func.func @transform_6(%arg0: i32) -> (i32, i32) {
    %c0_i32 = arith.constant 0 : i32
    %c0_i32_0 = arith.constant 0 : i32
    %c0_i32_1 = arith.constant 0 : i32
    return %c0_i32, %c0_i32_0 : i32, i32
  }
  func.func @transform_7(%arg0: i32) -> (i32, i32) {
    %c0_i32 = arith.constant 0 : i32
    %c0_i32_0 = arith.constant 0 : i32
    return %arg0, %c0_i32 : i32, i32
  }
}

</mosaic_0001>

<bundles_post_ra>
// kernel: tpu_custom_call.1
= control target key start
LH: loop header
LB: loop body
LE: loop exit
PB: predicated region body
PF: predicated region fallthrough
CT: control target
= control target key end

     0   :  { %12 = vsyncpa [#allocation3], 0  ;;  %s2200_s0 = inlined_call_operand.vmem [shape: f32[2,8], index: 0, kind: input, shape index: {}]   ;;  %s2201_s1 = inlined_call_operand.vmem [shape: bf16[8,256], index: 1, kind: input, shape index: {}]   ;;  %s2202_s2 = inlined_call_operand.vmem [shape: f32[1,256], index: 2, kind: input, shape index: {}]   ;;  %s2203_s3 = inlined_call_operand.hbm [shape: bf16[256,256], index: 3, kind: input, shape index: {}]   ;;  %s2204_s4 = inlined_call_operand.vmem [shape: f32[1,256], index: 4, kind: input, shape index: {}]   ;;  %s2205_s5 = inlined_call_operand.vmem [shape: bf16[256,2], index: 5, kind: input, shape index: {}]   ;;  %s2206_s6 = inlined_call_operand.vmem [shape: f32[1,2], index: 6, kind: input, shape index: {}]   ;;  %s2207_s7 = inlined_call_operand.hbm [shape: f32[2,2], index: 7, kind: output, shape index: {}]  }
   0x1   :  { %13 = vsyncpa [#allocation4], 0  ;;  %s1691_s24 = smov [#allocation2]   ;;  %s1643_s28 = scalar_lea.hbm %s2203_s3, 4096 }
   0x2   :  { %s25_s25 = sshll.u32 %s1691_s24, 4  ;;  %p1644_p0 = scmp.ne.s32.totalorder %s2203_s3, %s1643_s28  ;;  %s26_s25 = int_to_ptr.vmem [resolvable:$true] %s25_s25 }
   0x3   :  { %p1647_p1 = scmp.lt.u32.totalorder %s1643_s28, %s2203_s3 }
   0x5   :  { %p1649_p2 = pnand %p1647_p1, %p1644_p0 }
   0x7   :  { %1652 = shalt.err (!%p1649_p2)
}
   0x8   :  { %s1653_s10 = scalar_lea.vmem %s26_s25, 4096  ;;  %p1658_p4 = scmp.lt.s32.totalorder %s26_s25, %s26_s25 }
   0x9   :  { %p1654_p3 = scmp.ne.s32.totalorder %s26_s25, %s1653_s10  ;;  %p1659_p5 = scmp.lt.s32.totalorder %s1653_s10, %s1653_s10 }
   0xb   :  { %p1660_p6 = por %p1659_p5, %p1658_p4 }
   0xd   :  { %p1661_p7 = pnand %p1660_p6, %p1654_p3 }
   0xf   :  { %1664 = shalt.err (!%p1661_p7)
}
  0x10   :  { %s1692_s11 = smov 128   ;;  %s1693_s12 = smov 8  }
  0x11   :  { %31 = dma.hbm_to_vmem [thread:$0]  %s2203_s3, 4096, %s26_s25, [#allocation3], %s1692_s11, %s1692_s11, %s1693_s12  }
  0x12   :  { %1687 = dma.done.wait [#allocation3], 4096  }
  0x13   :  { %1688 = vsyncadd [#allocation3], 4294963200  ;;  %v1694_v0 = vmov 0   ;;  %v90_v1 = vld [vmem:[%s2201_s1] sm:$0xff]  ;;  %vm157_vm0 = vcmask 1043456   ;;  %v43_v3 = vld [vmem:[%s2200_s0 + $0x8] sm:$0xff] }
  0x14   :  { %196 = vmatprep.mubr.bf16.mxu0 %v1694_v0  ;;  %276 = vmatprep.mubr.bf16.mxu1 %v1694_v0  ;;  %v42_v2 = vld [vmem:[%s2200_s0] sm:$0xff]  ;;  %v1325_v4 = vcombine.high %v90_v1, %v90_v1  ;;  %v1324_v5 = vcombine.low %v90_v1, %v90_v1  ;;  %vm108_vm1 = vcmask 64512   ;;  %v59_v9 = vld [vmem:[%s2200_s0 + $0x88] sm:$0xff]  ;;  %v44_v11 = vld [vmem:[%s2200_s0 + $0x10] sm:$0xff]  ;;  %vm1274_vm2 = vcmask 15360  }
  0x15   :  { %v74_v7 = vpack.c.bf16 %v43_v3, %v42_v2  ;;  %v58_v8 = vld [vmem:[%s2200_s0 + $0x80] sm:$0xff]  ;;  %v45_v12 = vld [vmem:[%s2200_s0 + $0x18] sm:$0xff]  ;;  %v60_v13 = vld [vmem:[%s2200_s0 + $0x90] sm:$0xff] }
  0x16   :  { %1326 = vmatprep.subr.msk.bf16.mxu0 %vm157_vm0, %v1325_v4  ;;  %v159_v6 = vsel %vm157_vm0, %v1324_v5, 0  ;;  %1504 = vmatprep.subr.msk.bf16.mxu1 %vm157_vm0, %v1325_v4  ;;  %v82_v10 = vpack.c.bf16 %v59_v9, %v58_v8  ;;  %v61_v14 = vld [vmem:[%s2200_s0 + $0x98] sm:$0xff]  ;;  %v75_v15 = vpack.c.bf16 %v45_v12, %v44_v11  ;;  %v1515_v16 = vld [vmem:[#allocation2] ss:$8 sps:$4 sm:$0xff]   ;;  %v1517_v17 = vld [vmem:[#allocation2 + $0x4] ss:$8 sps:$4 sm:$0xff]  }
  0x17   :  { %165 = vmatpush1.bf16.msra.mxu0 %v159_v6  ;;  %1505 = vmatpush1.bf16.msra.mxu1 %v159_v6  ;;  %v83_v18 = vpack.c.bf16 %v61_v14, %v60_v13  ;;  %v1520_v19 = vld [vmem:[#allocation2 + $0x14] ss:$8 sps:$4 sm:$0xff]   ;;  %v46_v20 = vld [vmem:[%s2200_s0 + $0x20] sm:$0xff]  ;;  %v47_v21 = vld [vmem:[%s2200_s0 + $0x28] sm:$0xff] }
  0x18   :  { %657 = vmatprep.subr.bf16.mxu1 %v1517_v17  ;;  %v1518_v22 = vld [vmem:[#allocation2 + $0x10] ss:$8 sps:$4 sm:$0xff]   ;;  %v1523_v23 = vld [vmem:[#allocation2 + $0x24] ss:$8 sps:$4 sm:$0xff]   ;;  %v76_v26 = vpack.c.bf16 %v47_v21, %v46_v20  ;;  %v1521_v27 = vld [vmem:[#allocation2 + $0x20] ss:$8 sps:$4 sm:$0xff]   ;;  %v93_v21 = vlaneseq }
  0x19   :  { %v62_v24 = vld [vmem:[%s2200_s0 + $0xa0] sm:$0xff]  ;;  %v63_v25 = vld [vmem:[%s2200_s0 + $0xa8] sm:$0xff]  ;;  %v1526_v28 = vld [vmem:[#allocation2 + $0x34] ss:$8 sps:$4 sm:$0xff]  }
  0x1a   :  { %1327 = vmatmul.mubr.msk.bf16.vlgmr.msra.gmra.mrb[0].mxu0 %vm108_vm1, %v74_v7  ;;  %1335 = vmatmul.mubr.msk.bf16.vlgmr.msra.gmra.mrb[0].mxu1 %vm108_vm1, %v82_v10  ;;  %v84_v29 = vpack.c.bf16 %v63_v25, %v62_v24  ;;  %v48_v30 = vld [vmem:[%s2200_s0 + $0x30] sm:$0xff]  ;;  %v49_v31 = vld [vmem:[%s2200_s0 + $0x38] sm:$0xff]  ;;  %v1529_v33 = vld [vmem:[#allocation2 + $0x44] ss:$8 sps:$4 sm:$0xff]  }
  0x1b   :  { %206 = vmatprep.mubr.bf16.mxu0 %v1694_v0  ;;  %286 = vmatprep.mubr.bf16.mxu1 %v1694_v0  ;;  %v1524_v32 = vld [vmem:[#allocation2 + $0x30] ss:$8 sps:$4 sm:$0xff]   ;;  %v77_v36 = vpack.c.bf16 %v49_v31, %v48_v30  ;;  %v1527_v37 = vld [vmem:[#allocation2 + $0x40] ss:$8 sps:$4 sm:$0xff]   ;;  %v1532_v38 = vld [vmem:[#allocation2 + $0x54] ss:$8 sps:$4 sm:$0xff]  }
  0x1c   :  { %658 = vmatpush1.bf16.msra.mxu1 %v1515_v16  ;;  %v64_v34 = vld [vmem:[%s2200_s0 + $0xb0] sm:$0xff]  ;;  %v65_v35 = vld [vmem:[%s2200_s0 + $0xb8] sm:$0xff]  ;;  %v50_v41 = vld [vmem:[%s2200_s0 + $0x40] sm:$0xff] }
  0x1d   :  { %659 = vmatprep.subr.bf16.mxu1 %v1520_v19  ;;  %v85_v39 = vpack.c.bf16 %v65_v35, %v64_v34  ;;  %v1530_v40 = vld [vmem:[#allocation2 + $0x50] ss:$8 sps:$4 sm:$0xff]   ;;  %v51_v42 = vld [vmem:[%s2200_s0 + $0x48] sm:$0xff]  ;;  %v66_v44 = vld [vmem:[%s2200_s0 + $0xc0] sm:$0xff] }
  0x1e   :  { %v1535_v43 = vld [vmem:[#allocation2 + $0x64] ss:$8 sps:$4 sm:$0xff]   ;;  %v1533_v46 = vld [vmem:[#allocation2 + $0x60] ss:$8 sps:$4 sm:$0xff]   ;;  %v1538_v47 = vld [vmem:[#allocation2 + $0x74] ss:$8 sps:$4 sm:$0xff]   ;;  %v78_v48 = vpack.c.bf16 %v51_v42, %v50_v41 }
  0x1f   :  { %v67_v45 = vld [vmem:[%s2200_s0 + $0xc8] sm:$0xff]  ;;  %v1536_v50 = vld [vmem:[#allocation2 + $0x70] ss:$8 sps:$4 sm:$0xff]   ;;  %v1544_v58 = vld [vmem:[#allocation2 + $0x94] ss:$8 sps:$4 sm:$0xff]  }
  0x20   :  { %660 = vmatpush1.bf16.msra.mxu1 %v1518_v22  ;;  %v86_v49 = vpack.c.bf16 %v67_v45, %v66_v44  ;;  %v52_v51 = vld [vmem:[%s2200_s0 + $0x50] sm:$0xff]  ;;  %v53_v52 = vld [vmem:[%s2200_s0 + $0x58] sm:$0xff]  ;;  %v1541_v53 = vld [vmem:[#allocation2 + $0x84] ss:$8 sps:$4 sm:$0xff]   ;;  %v1881_v22 = vshrl.u32 %v93_v21, 7 }
  0x21   :  { %661 = vmatprep.subr.bf16.mxu1 %v1523_v23  ;;  %v68_v54 = vld [vmem:[%s2200_s0 + $0xd0] sm:$0xff]  ;;  %v69_v55 = vld [vmem:[%s2200_s0 + $0xd8] sm:$0xff]  ;;  %v79_v56 = vpack.c.bf16 %v53_v52, %v52_v51  ;;  %v1539_v57 = vld [vmem:[#allocation2 + $0x80] ss:$8 sps:$4 sm:$0xff]  }
  0x22   :  { %1328 = vmatmul.mubr.msk.bf16.gmra.mrb[4].mxu0 %vm108_vm1, %v75_v15  ;;  %1336 = vmatmul.mubr.msk.bf16.gmra.mrb[4].mxu1 %vm108_vm1, %v83_v18  ;;  %v87_v59 = vpack.c.bf16 %v69_v55, %v68_v54  ;;  %v1542_v60 = vld [vmem:[#allocation2 + $0x90] ss:$8 sps:$4 sm:$0xff]   ;;  %v54_v61 = vld [vmem:[%s2200_s0 + $0x60] sm:$0xff]  ;;  %v55_v62 = vld [vmem:[%s2200_s0 + $0x68] sm:$0xff]  ;;  %v95_v23 = vsub.s32 0, %v1881_v22  ;;  %v99_v25 = vsub.s32 1, %v1881_v22 }
  0x23   :  { %216 = vmatprep.mubr.bf16.mxu0 %v1694_v0  ;;  %296 = vmatprep.mubr.bf16.mxu1 %v1694_v0  ;;  %v1547_v63 = vld [vmem:[#allocation2 + $0xa4] ss:$8 sps:$4 sm:$0xff]   ;;  %v80_v3 = vpack.c.bf16 %v55_v62, %v54_v61  ;;  %v1545_v4 = vld [vmem:[#allocation2 + $0xa0] ss:$8 sps:$4 sm:$0xff]   ;;  %v1550_v5 = vld [vmem:[#allocation2 + $0xb4] ss:$8 sps:$4 sm:$0xff]  }
  0x24   :  { %662 = vmatpush1.bf16.msra.mxu1 %v1521_v27  ;;  %v70_v1 = vld [vmem:[%s2200_s0 + $0xe0] sm:$0xff]  ;;  %v71_v2 = vld [vmem:[%s2200_s0 + $0xe8] sm:$0xff]  ;;  %v1548_v7 = vld [vmem:[#allocation2 + $0xb0] ss:$8 sps:$4 sm:$0xff]  }
  0x25   :  { %663 = vmatprep.subr.bf16.mxu1 %v1526_v28  ;;  %v88_v6 = vpack.c.bf16 %v71_v2, %v70_v1  ;;  %v56_v8 = vld [vmem:[%s2200_s0 + $0x70] sm:$0xff]  ;;  %v57_v9 = vld [vmem:[%s2200_s0 + $0x78] sm:$0xff]  ;;  %v1553_v10 = vld [vmem:[#allocation2 + $0xc4] ss:$8 sps:$4 sm:$0xff]  }
  0x26   :  { %v72_v11 = vld [vmem:[%s2200_s0 + $0xf0] sm:$0xff]  ;;  %v73_v12 = vld [vmem:[%s2200_s0 + $0xf8] sm:$0xff]  ;;  %v81_v13 = vpack.c.bf16 %v57_v9, %v56_v8  ;;  %v1551_v14 = vld [vmem:[#allocation2 + $0xc0] ss:$8 sps:$4 sm:$0xff]  }
  0x27   :  { %v1556_v15 = vld [vmem:[#allocation2 + $0xd4] ss:$8 sps:$4 sm:$0xff]   ;;  %v89_v16 = vpack.c.bf16 %v73_v12, %v72_v11  ;;  %v1554_v17 = vld [vmem:[#allocation2 + $0xd0] ss:$8 sps:$4 sm:$0xff]   ;;  %v1557_v18 = vld [vmem:[#allocation2 + $0xe0] ss:$8 sps:$4 sm:$0xff]  }
  0x28   :  { %664 = vmatpush1.bf16.msra.mxu1 %v1524_v32  ;;  %v1562_v19 = vld [vmem:[#allocation2 + $0xf4] ss:$8 sps:$4 sm:$0xff]   ;;  %v1560_v20 = vld [vmem:[#allocation2 + $0xf0] ss:$8 sps:$4 sm:$0xff]   ;;  %v91_v24 = vld [vmem:[%s2202_s2] sm:$0x3] }
  0x29   :  { %665 = vmatprep.subr.bf16.mxu1 %v1529_v33  ;;  %v1894_v27 = vrot.slane %v91_v24, %v99_v25  ;;  %v1569_v9 = vld [vmem:[%s2205_s5 + $0x58] sm:$0xff]  }
  0x2a   :  { %1329 = vmatmul.mubr.msk.bf16.gmra.mrb[8].mxu0 %vm108_vm1, %v76_v26  ;;  %1337 = vmatmul.mubr.msk.bf16.gmra.mrb[8].mxu1 %vm108_vm1, %v84_v29  ;;  %v1890_v26 = vrot.slane %v91_v24, %v95_v23  ;;  %v1570_v21 = vld [vmem:[%s2205_s5 + $0x18] sm:$0xff]  }
  0x2b   :  { %226 = vmatprep.mubr.bf16.mxu0 %v1694_v0  ;;  %306 = vmatprep.mubr.bf16.mxu1 %v1694_v0 }
  0x2c   :  { %666 = vmatpush1.bf16.msra.mxu1 %v1527_v37 }
  0x2d   :  { %667 = vmatprep.subr.bf16.mxu1 %v1532_v38  ;;  %v1563_v38 = vld [vmem:[%s2205_s5 + $0x40] sm:$0xff]  }
  0x2e   :  { %1392 = vmatprep.subr.bf16.mxu0 %v1563_v38 }
  0x30   :  { %668 = vmatpush1.bf16.msra.mxu1 %v1530_v40  ;;  %v1565_v40 = vld [vmem:[%s2205_s5 + $0x48] sm:$0xff]  }
  0x31   :  { %669 = vmatprep.subr.bf16.mxu1 %v1535_v43 }
  0x32   :  { %1330 = vmatmul.mubr.msk.bf16.gmra.mrb[12].mxu0 %vm108_vm1, %v77_v36  ;;  %1338 = vmatmul.mubr.msk.bf16.gmra.mrb[12].mxu1 %vm108_vm1, %v85_v39  ;;  %v1564_v39 = vld [vmem:[%s2205_s5] sm:$0xff]  }
  0x33   :  { %236 = vmatprep.mubr.bf16.mxu0 %v1694_v0  ;;  %316 = vmatprep.mubr.bf16.mxu1 %v1694_v0 }
  0x34   :  { %670 = vmatpush1.bf16.msra.mxu1 %v1533_v46  ;;  %1393 = vmatpush3.bf16.msra.mxu0 %v1564_v39 }
  0x35   :  { %671 = vmatprep.subr.bf16.mxu1 %v1538_v47  ;;  %1394 = vmatprep.subr.bf16.mxu0 %v1565_v40  ;;  %v1572_v40 = vld [vmem:[%s2205_s5 + $0x20] sm:$0xff]  }
  0x38   :  { %672 = vmatpush1.bf16.msra.mxu1 %v1536_v50 }
  0x39   :  { %673 = vmatprep.subr.bf16.mxu1 %v1541_v53  ;;  %v1566_v53 = vld [vmem:[%s2205_s5 + $0x8] sm:$0xff]  }
  0x3a   :  { %1331 = vmatmul.mubr.msk.bf16.gmra.mrb[16].mxu0 %vm108_vm1, %v78_v48  ;;  %1339 = vmatmul.mubr.msk.bf16.gmra.mrb[16].mxu1 %vm108_vm1, %v86_v49 }
  0x3b   :  { %246 = vmatprep.mubr.bf16.mxu0 %v1694_v0  ;;  %326 = vmatprep.mubr.bf16.mxu1 %v1694_v0 }
  0x3c   :  { %674 = vmatpush1.bf16.msra.mxu1 %v1539_v57  ;;  %1395 = vmatpush3.bf16.msra.mxu0 %v1566_v53 }
  0x3d   :  { %675 = vmatprep.subr.bf16.mxu1 %v1544_v58 }
  0x40   :  { %676 = vmatpush1.bf16.msra.mxu1 %v1542_v60 }
  0x41   :  { %677 = vmatprep.subr.bf16.mxu1 %v1547_v63 }
  0x42   :  { %1332 = vmatmul.mubr.msk.bf16.gmra.mrb[20].mxu0 %vm108_vm1, %v79_v56  ;;  %1340 = vmatmul.mubr.msk.bf16.gmra.mrb[20].mxu1 %vm108_vm1, %v87_v59  ;;  %v1567_v56 = vld [vmem:[%s2205_s5 + $0x50] sm:$0xff]  }
  0x43   :  { %256 = vmatprep.mubr.bf16.mxu0 %v1694_v0  ;;  %336 = vmatprep.mubr.bf16.mxu1 %v1694_v0 }
  0x44   :  { %678 = vmatpush1.bf16.msra.mxu1 %v1545_v4  ;;  %v1568_v4 = vld [vmem:[%s2205_s5 + $0x10] sm:$0xff]   ;;  %1396 = vmatprep.subr.bf16.mxu0 %v1567_v56 }
  0x45   :  { %679 = vmatprep.subr.bf16.mxu1 %v1550_v5  ;;  %1397 = vmatpush3.bf16.msra.mxu0 %v1568_v4 }
  0x46   :  { %1398 = vmatprep.subr.bf16.mxu0 %v1569_v9 }
  0x48   :  { %680 = vmatpush1.bf16.msra.mxu1 %v1548_v7 }
  0x49   :  { %681 = vmatprep.subr.bf16.mxu1 %v1553_v10  ;;  %1399 = vmatpush3.bf16.msra.mxu0 %v1570_v21 }
  0x4a   :  { %1333 = vmatmul.mubr.msk.bf16.gmra.mrb[24].mxu0 %vm108_vm1, %v80_v3  ;;  %1341 = vmatmul.mubr.msk.bf16.gmra.mrb[24].mxu1 %vm108_vm1, %v88_v6 }
  0x4b   :  { %266 = vmatprep.mubr.bf16.mxu0 %v1694_v0  ;;  %346 = vmatprep.mubr.bf16.mxu1 %v1694_v0  ;;  %v1559_v0 = vld [vmem:[#allocation2 + $0xe4] ss:$8 sps:$4 sm:$0xff]  }
  0x4c   :  { %682 = vmatpush1.bf16.msra.mxu1 %v1551_v14 }
  0x4d   :  { %683 = vmatprep.subr.bf16.mxu1 %v1556_v15 }
  0x50   :  { %684 = vmatpush1.bf16.msra.mxu1 %v1554_v17 }
  0x51   :  { %685 = vmatprep.subr.bf16.mxu1 %v1559_v0 }
  0x52   :  { %1334 = vmatmul.mubr.msk.bf16.gmra.mrb[28].mxu0 %vm108_vm1, %v81_v13  ;;  %1342 = vmatmul.mubr.msk.bf16.gmra.mrb[28].mxu1 %vm108_vm1, %v89_v16 }
  0x54   :  { %686 = vmatpush1.bf16.msra.mxu1 %v1557_v18 }
  0x55   :  { %687 = vmatprep.subr.bf16.mxu1 %v1562_v19 }
  0x58   :  { %688 = vmatpush1.bf16.msra.mxu1 %v1560_v20 }
  0xed   :  { %v198_v28 = vpop.f32.mrb[0].mxu0  ;;  %v278_v33 = vpop.f32.mrb[0].mxu1 }
  0xee   :  { %v199_v29 = vadd.f32 %v198_v28, %v1890_v26  ;;  %v200_v30 = vpop.f32.mrb[1].mxu0  ;;  %v279_v36 = vadd.f32 %v278_v33, %v1890_v26  ;;  %v280_v37 = vpop.f32.mrb[1].mxu1 }
  0xef   :  { %v201_v31 = vadd.f32 %v200_v30, %v1894_v27  ;;  %v202_v32 = vpop.f32.mrb[2].mxu0  ;;  %v281_v42 = vadd.f32 %v280_v37, %v1894_v27  ;;  %v282_v43 = vpop.f32.mrb[2].mxu1 }
  0xf0   :  { %v203_v34 = vadd.f32 %v202_v32, %v1890_v26  ;;  %v204_v35 = vpop.f32.mrb[3].mxu0  ;;  %v357_v44 = vmax.f32 %v199_v29, 0.0  ;;  %v389_v46 = vmax.f32 %v279_v36, 0.0  ;;  %v283_v47 = vadd.f32 %v282_v43, %v1890_v26  ;;  %v284_v48 = vpop.f32.mrb[3].mxu1  ;;  %v1571_v29 = vld [vmem:[%s2205_s5 + $0x60] sm:$0xff]  }
  0xf1   :  { %v205_v41 = vadd.f32 %v204_v35, %v1894_v27  ;;  %v358_v49 = vmax.f32 %v201_v31, 0.0  ;;  %v390_v51 = vmax.f32 %v281_v42, 0.0  ;;  %v285_v52 = vadd.f32 %v284_v48, %v1894_v27  ;;  %1400 = vmatprep.subr.bf16.mxu0 %v1571_v29 }
  0xf2   :  { %v359_v45 = vmax.f32 %v203_v34, 0.0  ;;  %v391_v55 = vmax.f32 %v283_v47, 0.0  ;;  %1401 = vmatpush3.bf16.msra.mxu0 %v1572_v40 }
  0xf3   :  { %v360_v50 = vmax.f32 %v205_v41, 0.0  ;;  %v392_v59 = vmax.f32 %v285_v52, 0.0 }
  0xf4   :  { %v421_v54 = vpack.c.bf16 %v359_v45, %v357_v44  ;;  %v1920_v62 = vpack.c.bf16 %v391_v55, %v389_v46  ;;  %v1573_v45 = vld [vmem:[%s2205_s5 + $0x68] sm:$0xff]  }
  0xf5   :  { %v422_v57 = vpack.c.bf16 %v360_v50, %v358_v49  ;;  %v208_v58 = vpop.f32.mrb[4].mxu0  ;;  %v1923_v2 = vpack.c.bf16 %v392_v59, %v390_v51  ;;  %v288_v3 = vpop.f32.mrb[4].mxu1  ;;  %1402 = vmatprep.subr.bf16.mxu0 %v1573_v45 }
  0xf6   :  { %v209_v60 = vadd.f32 %v208_v58, %v1890_v26  ;;  %v210_v61 = vpop.f32.mrb[5].mxu0  ;;  %v289_v7 = vadd.f32 %v288_v3, %v1890_v26  ;;  %v290_v8 = vpop.f32.mrb[5].mxu1  ;;  %v1574_v58 = vld [vmem:[%s2205_s5 + $0x28] sm:$0xff]  }
  0xf7   :  { %v211_v63 = vadd.f32 %v210_v61, %v1894_v27  ;;  %v212_v1 = vpop.f32.mrb[6].mxu0  ;;  %689 = vmatprep.mubr.bf16.mxu1 %v422_v57  ;;  %v291_v11 = vadd.f32 %v290_v8, %v1894_v27  ;;  %v292_v12 = vpop.f32.mrb[6].mxu1  ;;  %v1575_v61 = vld [vmem:[%s2205_s5 + $0x70] sm:$0xff]   ;;  %1403 = vmatpush3.bf16.msra.mxu0 %v1574_v58 }
  0xf8   :  { %v213_v5 = vadd.f32 %v212_v1, %v1890_v26  ;;  %v214_v6 = vpop.f32.mrb[7].mxu0  ;;  %690 = vmatmul.mubr.bf16.vlgmr.msra.gmra.mrb[32].mxu1 %v421_v54  ;;  %v361_v13 = vmax.f32 %v209_v60, 0.0  ;;  %v393_v15 = vmax.f32 %v289_v7, 0.0  ;;  %v293_v16 = vadd.f32 %v292_v12, %v1890_v26  ;;  %v294_v17 = vpop.f32.mrb[7].mxu1  ;;  %1404 = vmatprep.subr.bf16.mxu0 %v1575_v61 }
  0xf9   :  { %v215_v10 = vadd.f32 %v214_v6, %v1894_v27  ;;  %v362_v0 = vmax.f32 %v211_v63, 0.0  ;;  %v394_v19 = vmax.f32 %v291_v11, 0.0  ;;  %v295_v20 = vadd.f32 %v294_v17, %v1894_v27  ;;  %v1576_v11 = vld [vmem:[%s2205_s5 + $0x30] sm:$0xff]  }
  0xfa   :  { %v363_v14 = vmax.f32 %v213_v5, 0.0  ;;  %v395_v28 = vmax.f32 %v293_v16, 0.0 }
  0xfb   :  { %v364_v18 = vmax.f32 %v215_v10, 0.0  ;;  %v396_v32 = vmax.f32 %v295_v20, 0.0  ;;  %1405 = vmatpush3.bf16.msra.mxu0 %v1576_v11 }
  0xfc   :  { %v423_v24 = vpack.c.bf16 %v363_v14, %v361_v13  ;;  %v1944_v35 = vpack.c.bf16 %v395_v28, %v393_v15 }
  0xfd   :  { %v424_v30 = vpack.c.bf16 %v364_v18, %v362_v0  ;;  %v218_v31 = vpop.f32.mrb[8].mxu0  ;;  %v1947_v38 = vpack.c.bf16 %v396_v32, %v394_v19  ;;  %v298_v39 = vpop.f32.mrb[8].mxu1 }
  0xfe   :  { %v219_v33 = vadd.f32 %v218_v31, %v1890_v26  ;;  %v220_v34 = vpop.f32.mrb[9].mxu0  ;;  %v299_v43 = vadd.f32 %v298_v39, %v1890_v26  ;;  %v300_v44 = vpop.f32.mrb[9].mxu1 }
  0xff   :  { %v221_v36 = vadd.f32 %v220_v34, %v1894_v27  ;;  %v222_v37 = vpop.f32.mrb[10].mxu0  ;;  %699 = vmatprep.mubr.bf16.mxu1 %v424_v30  ;;  %v301_v47 = vadd.f32 %v300_v44, %v1894_v27  ;;  %v302_v48 = vpop.f32.mrb[10].mxu1 }
 0x100   :  { %v223_v41 = vadd.f32 %v222_v37, %v1890_v26  ;;  %v224_v42 = vpop.f32.mrb[11].mxu0  ;;  %700 = vmatmul.mubr.bf16.gmra.mrb[36].mxu1 %v423_v24  ;;  %v365_v49 = vmax.f32 %v219_v33, 0.0  ;;  %v397_v51 = vmax.f32 %v299_v43, 0.0  ;;  %v303_v52 = vadd.f32 %v302_v48, %v1890_v26  ;;  %v304_v53 = vpop.f32.mrb[11].mxu1 }
 0x101   :  { %v225_v46 = vadd.f32 %v224_v42, %v1894_v27  ;;  %v366_v54 = vmax.f32 %v221_v36, 0.0  ;;  %v398_v56 = vmax.f32 %v301_v47, 0.0  ;;  %v305_v57 = vadd.f32 %v304_v53, %v1894_v27 }
 0x102   :  { %v367_v50 = vmax.f32 %v223_v41, 0.0  ;;  %v399_v60 = vmax.f32 %v303_v52, 0.0 }
 0x103   :  { %v368_v55 = vmax.f32 %v225_v46, 0.0  ;;  %v400_v3 = vmax.f32 %v305_v57, 0.0 }
 0x104   :  { %v425_v59 = vpack.c.bf16 %v367_v50, %v365_v49  ;;  %v1968_v6 = vpack.c.bf16 %v399_v60, %v397_v51 }
 0x105   :  { %v426_v63 = vpack.c.bf16 %v368_v55, %v366_v54  ;;  %v228_v1 = vpop.f32.mrb[12].mxu0  ;;  %v1971_v9 = vpack.c.bf16 %v400_v3, %v398_v56  ;;  %v308_v10 = vpop.f32.mrb[12].mxu1 }
 0x106   :  { %v229_v4 = vadd.f32 %v228_v1, %v1890_v26  ;;  %v230_v5 = vpop.f32.mrb[13].mxu0  ;;  %v309_v14 = vadd.f32 %v308_v10, %v1890_v26  ;;  %v310_v15 = vpop.f32.mrb[13].mxu1 }
 0x107   :  { %v231_v7 = vadd.f32 %v230_v5, %v1894_v27  ;;  %v232_v8 = vpop.f32.mrb[14].mxu0  ;;  %709 = vmatprep.mubr.bf16.mxu1 %v426_v63  ;;  %v311_v17 = vadd.f32 %v310_v15, %v1894_v27  ;;  %v312_v0 = vpop.f32.mrb[14].mxu1 }
 0x108   :  { %v233_v12 = vadd.f32 %v232_v8, %v1890_v26  ;;  %v234_v13 = vpop.f32.mrb[15].mxu0  ;;  %710 = vmatmul.mubr.bf16.gmra.mrb[40].mxu1 %v425_v59  ;;  %v369_v18 = vmax.f32 %v229_v4, 0.0  ;;  %v401_v20 = vmax.f32 %v309_v14, 0.0  ;;  %v313_v21 = vadd.f32 %v312_v0, %v1890_v26  ;;  %v314_v24 = vpop.f32.mrb[15].mxu1 }
 0x109   :  { %v235_v16 = vadd.f32 %v234_v13, %v1894_v27  ;;  %v370_v28 = vmax.f32 %v231_v7, 0.0  ;;  %v402_v30 = vmax.f32 %v311_v17, 0.0  ;;  %v315_v31 = vadd.f32 %v314_v24, %v1894_v27 }
 0x10a   :  { %v371_v19 = vmax.f32 %v233_v12, 0.0  ;;  %v403_v33 = vmax.f32 %v313_v21, 0.0 }
 0x10b   :  { %v372_v29 = vmax.f32 %v235_v16, 0.0  ;;  %v404_v37 = vmax.f32 %v315_v31, 0.0 }
 0x10c   :  { %v427_v32 = vpack.c.bf16 %v371_v19, %v369_v18  ;;  %v1983_v41 = vpack.c.bf16 %v403_v33, %v401_v20 }
 0x10d   :  { %v428_v34 = vpack.c.bf16 %v372_v29, %v370_v28  ;;  %v238_v36 = vpop.f32.mrb[16].mxu0  ;;  %v1986_v44 = vpack.c.bf16 %v404_v37, %v402_v30  ;;  %v318_v45 = vpop.f32.mrb[16].mxu1 }
 0x10e   :  { %v239_v39 = vadd.f32 %v238_v36, %v1890_v26  ;;  %v240_v40 = vpop.f32.mrb[17].mxu0  ;;  %v319_v48 = vadd.f32 %v318_v45, %v1890_v26  ;;  %v320_v49 = vpop.f32.mrb[17].mxu1 }
 0x10f   :  { %v241_v42 = vadd.f32 %v240_v40, %v1894_v27  ;;  %v242_v43 = vpop.f32.mrb[18].mxu0  ;;  %719 = vmatprep.mubr.bf16.mxu1 %v428_v34  ;;  %v321_v51 = vadd.f32 %v320_v49, %v1894_v27  ;;  %v322_v52 = vpop.f32.mrb[18].mxu1 }
 0x110   :  { %v243_v46 = vadd.f32 %v242_v43, %v1890_v26  ;;  %v244_v47 = vpop.f32.mrb[19].mxu0  ;;  %720 = vmatmul.mubr.bf16.gmra.mrb[44].mxu1 %v427_v32  ;;  %v373_v53 = vmax.f32 %v239_v39, 0.0  ;;  %v405_v55 = vmax.f32 %v319_v48, 0.0  ;;  %v323_v56 = vadd.f32 %v322_v52, %v1890_v26  ;;  %v324_v57 = vpop.f32.mrb[19].mxu1 }
 0x111   :  { %v245_v50 = vadd.f32 %v244_v47, %v1894_v27  ;;  %v374_v58 = vmax.f32 %v241_v42, 0.0  ;;  %v406_v60 = vmax.f32 %v321_v51, 0.0  ;;  %v325_v61 = vadd.f32 %v324_v57, %v1894_v27 }
 0x112   :  { %v375_v54 = vmax.f32 %v243_v46, 0.0  ;;  %v407_v1 = vmax.f32 %v323_v56, 0.0 }
 0x113   :  { %v376_v59 = vmax.f32 %v245_v50, 0.0  ;;  %v408_v5 = vmax.f32 %v325_v61, 0.0 }
 0x114   :  { %v429_v63 = vpack.c.bf16 %v375_v54, %v373_v53  ;;  %v1995_v10 = vpack.c.bf16 %v407_v1, %v405_v55 }
 0x115   :  { %v430_v3 = vpack.c.bf16 %v376_v59, %v374_v58  ;;  %v248_v4 = vpop.f32.mrb[20].mxu0  ;;  %v1998_v13 = vpack.c.bf16 %v408_v5, %v406_v60  ;;  %v328_v14 = vpop.f32.mrb[20].mxu1 }
 0x116   :  { %v249_v7 = vadd.f32 %v248_v4, %v1890_v26  ;;  %v250_v8 = vpop.f32.mrb[21].mxu0  ;;  %v329_v17 = vadd.f32 %v328_v14, %v1890_v26  ;;  %v330_v0 = vpop.f32.mrb[21].mxu1 }
 0x117   :  { %v251_v11 = vadd.f32 %v250_v8, %v1894_v27  ;;  %v252_v12 = vpop.f32.mrb[22].mxu0  ;;  %729 = vmatprep.mubr.bf16.mxu1 %v430_v3  ;;  %v331_v19 = vadd.f32 %v330_v0, %v1894_v27  ;;  %v332_v20 = vpop.f32.mrb[22].mxu1 }
 0x118   :  { %v253_v15 = vadd.f32 %v252_v12, %v1890_v26  ;;  %v254_v16 = vpop.f32.mrb[23].mxu0  ;;  %730 = vmatmul.mubr.bf16.gmra.mrb[48].mxu1 %v429_v63  ;;  %v377_v21 = vmax.f32 %v249_v7, 0.0  ;;  %v409_v28 = vmax.f32 %v329_v17, 0.0  ;;  %v333_v29 = vadd.f32 %v332_v20, %v1890_v26  ;;  %v334_v30 = vpop.f32.mrb[23].mxu1 }
 0x119   :  { %v255_v18 = vadd.f32 %v254_v16, %v1894_v27  ;;  %v378_v31 = vmax.f32 %v251_v11, 0.0  ;;  %v410_v33 = vmax.f32 %v331_v19, 0.0  ;;  %v335_v34 = vadd.f32 %v334_v30, %v1894_v27 }
 0x11a   :  { %v379_v24 = vmax.f32 %v253_v15, 0.0  ;;  %v411_v37 = vmax.f32 %v333_v29, 0.0 }
 0x11b   :  { %v380_v32 = vmax.f32 %v255_v18, 0.0  ;;  %v412_v42 = vmax.f32 %v335_v34, 0.0 }
 0x11c   :  { %v431_v36 = vpack.c.bf16 %v379_v24, %v377_v21  ;;  %v2007_v46 = vpack.c.bf16 %v411_v37, %v409_v28 }
 0x11d   :  { %v432_v39 = vpack.c.bf16 %v380_v32, %v378_v31  ;;  %v258_v40 = vpop.f32.mrb[24].mxu0  ;;  %v2010_v49 = vpack.c.bf16 %v412_v42, %v410_v33  ;;  %v338_v50 = vpop.f32.mrb[24].mxu1 }
 0x11e   :  { %v259_v43 = vadd.f32 %v258_v40, %v1890_v26  ;;  %v260_v45 = vpop.f32.mrb[25].mxu0  ;;  %v339_v53 = vadd.f32 %v338_v50, %v1890_v26  ;;  %v340_v54 = vpop.f32.mrb[25].mxu1 }
 0x11f   :  { %v261_v47 = vadd.f32 %v260_v45, %v1894_v27  ;;  %v262_v48 = vpop.f32.mrb[26].mxu0  ;;  %739 = vmatprep.mubr.bf16.mxu1 %v432_v39  ;;  %v341_v56 = vadd.f32 %v340_v54, %v1894_v27  ;;  %v342_v57 = vpop.f32.mrb[26].mxu1 }
 0x120   :  { %v263_v51 = vadd.f32 %v262_v48, %v1890_v26  ;;  %v264_v52 = vpop.f32.mrb[27].mxu0  ;;  %740 = vmatmul.mubr.bf16.gmra.mrb[52].mxu1 %v431_v36  ;;  %v381_v58 = vmax.f32 %v259_v43, 0.0  ;;  %v413_v60 = vmax.f32 %v339_v53, 0.0  ;;  %v343_v61 = vadd.f32 %v342_v57, %v1890_v26  ;;  %v344_v63 = vpop.f32.mrb[27].mxu1 }
 0x121   :  { %v265_v55 = vadd.f32 %v264_v52, %v1894_v27  ;;  %v382_v1 = vmax.f32 %v261_v47, 0.0  ;;  %v414_v4 = vmax.f32 %v341_v56, 0.0  ;;  %v345_v5 = vadd.f32 %v344_v63, %v1894_v27 }
 0x122   :  { %v383_v59 = vmax.f32 %v263_v51, 0.0  ;;  %v415_v8 = vmax.f32 %v343_v61, 0.0 }
 0x123   :  { %v384_v3 = vmax.f32 %v265_v55, 0.0  ;;  %v416_v14 = vmax.f32 %v345_v5, 0.0 }
 0x124   :  { %v433_v7 = vpack.c.bf16 %v383_v59, %v381_v58  ;;  %v449_v17 = vpack.c.bf16 %v415_v8, %v413_v60 }
 0x125   :  { %v434_v11 = vpack.c.bf16 %v384_v3, %v382_v1  ;;  %v268_v12 = vpop.f32.mrb[28].mxu0  ;;  %v450_v19 = vpack.c.bf16 %v416_v14, %v414_v4  ;;  %v348_v20 = vpop.f32.mrb[28].mxu1 }
 0x126   :  { %v269_v15 = vadd.f32 %v268_v12, %v1890_v26  ;;  %v270_v16 = vpop.f32.mrb[29].mxu0  ;;  %v349_v28 = vadd.f32 %v348_v20, %v1890_v26  ;;  %v350_v29 = vpop.f32.mrb[29].mxu1 }
 0x127   :  { %v271_v0 = vadd.f32 %v270_v16, %v1894_v27  ;;  %v272_v18 = vpop.f32.mrb[30].mxu0  ;;  %749 = vmatprep.mubr.bf16.mxu1 %v434_v11  ;;  %v351_v31 = vadd.f32 %v350_v29, %v1894_v27  ;;  %v352_v32 = vpop.f32.mrb[30].mxu1 }
 0x128   :  { %v273_v21 = vadd.f32 %v272_v18, %v1890_v26  ;;  %v274_v24 = vpop.f32.mrb[31].mxu0  ;;  %750 = vmatmul.mubr.bf16.gmra.mrb[56].mxu1 %v433_v7  ;;  %v385_v33 = vmax.f32 %v269_v15, 0.0  ;;  %v417_v36 = vmax.f32 %v349_v28, 0.0  ;;  %v353_v37 = vadd.f32 %v352_v32, %v1890_v26  ;;  %v354_v39 = vpop.f32.mrb[31].mxu1  ;;  %v1577_v26 = vld [vmem:[%s2205_s5 + $0x78] sm:$0xff]  }
 0x129   :  { %v275_v30 = vadd.f32 %v274_v24, %v1894_v27  ;;  %v386_v40 = vmax.f32 %v271_v0, 0.0  ;;  %v418_v43 = vmax.f32 %v351_v31, 0.0  ;;  %v355_v45 = vadd.f32 %v354_v39, %v1894_v27  ;;  %v1578_v27 = vld [vmem:[%s2205_s5 + $0x38] sm:$0xff]   ;;  %1406 = vmatprep.subr.bf16.mxu0 %v1577_v26 }
 0x12a   :  { %v387_v34 = vmax.f32 %v273_v21, 0.0  ;;  %v419_v48 = vmax.f32 %v353_v37, 0.0  ;;  %1407 = vmatpush3.bf16.msra.mxu0 %v1578_v27 }
 0x12b   :  { %v388_v42 = vmax.f32 %v275_v30, 0.0  ;;  %v420_v51 = vmax.f32 %v355_v45, 0.0 }
 0x12c   :  { %v435_v47 = vpack.c.bf16 %v387_v34, %v385_v33  ;;  %v451_v52 = vpack.c.bf16 %v419_v48, %v417_v36 }
 0x12d   :  { %v436_v50 = vpack.c.bf16 %v388_v42, %v386_v40  ;;  %v452_v53 = vpack.c.bf16 %v420_v51, %v418_v43 }
 0x12f   :  { %759 = vmatprep.mubr.bf16.mxu1 %v436_v50 }
 0x130   :  { %760 = vmatmul.mubr.bf16.gmra.mrb[60].mxu1 %v435_v47 }
 0x131   :  { %769 = vmatprep.mubr.bf16.mxu1 %v1923_v2 }
 0x138   :  { %770 = vmatmul.mubr.bf16.gmra.mrb[64].mxu1 %v1920_v62  ;;  %v485_v62 = vld [vmem:[%s2204_s4] sm:$0x3] }
 0x139   :  { %779 = vmatprep.mubr.bf16.mxu1 %v1947_v38  ;;  %v2049_v2 = vrot.slane %v485_v62, %v95_v23 }
 0x140   :  { %780 = vmatmul.mubr.bf16.gmra.mrb[68].mxu1 %v1944_v35  ;;  %v2053_v35 = vrot.slane %v485_v62, %v99_v25 }
 0x141   :  { %789 = vmatprep.mubr.bf16.mxu1 %v1971_v9 }
 0x148   :  { %790 = vmatmul.mubr.bf16.gmra.mrb[72].mxu1 %v1968_v6 }
 0x149   :  { %799 = vmatprep.mubr.bf16.mxu1 %v1986_v44 }
 0x150   :  { %800 = vmatmul.mubr.bf16.gmra.mrb[76].mxu1 %v1983_v41 }
 0x151   :  { %809 = vmatprep.mubr.bf16.mxu1 %v1998_v13 }
 0x158   :  { %810 = vmatmul.mubr.bf16.gmra.mrb[80].mxu1 %v1995_v10 }
 0x159   :  { %819 = vmatprep.mubr.bf16.mxu1 %v2010_v49 }
 0x160   :  { %820 = vmatmul.mubr.bf16.gmra.mrb[84].mxu1 %v2007_v46 }
 0x161   :  { %829 = vmatprep.mubr.bf16.mxu1 %v450_v19 }
 0x168   :  { %830 = vmatmul.mubr.bf16.gmra.mrb[88].mxu1 %v449_v17 }
 0x169   :  { %839 = vmatprep.mubr.bf16.mxu1 %v452_v53 }
 0x170   :  { %840 = vmatmul.mubr.bf16.gmra.mrb[92].mxu1 %v451_v52 }
 0x1cb   :  { %v691_v38 = vpop.f32.mrb[32].mxu1 }
 0x1cc   :  { %v692_v6 = vadd.f32 %v691_v38, %v2049_v2  ;;  %v693_v9 = vpop.f32.mrb[33].mxu1 }
 0x1cd   :  { %v694_v41 = vadd.f32 %v693_v9, %v2053_v35  ;;  %v695_v44 = vpop.f32.mrb[34].mxu1 }
 0x1ce   :  { %v696_v10 = vadd.f32 %v695_v44, %v2049_v2  ;;  %v697_v13 = vpop.f32.mrb[35].mxu1  ;;  %v850_v49 = vmax.f32 %v692_v6, 0.0 }
 0x1cf   :  { %v698_v46 = vadd.f32 %v697_v13, %v2053_v35  ;;  %v851_v23 = vmax.f32 %v694_v41, 0.0 }
 0x1d0   :  { %v852_v54 = vmax.f32 %v696_v10, 0.0 }
 0x1d1   :  { %v853_v55 = vmax.f32 %v698_v46, 0.0 }
 0x1d2   :  { %v914_v56 = vpack.c.bf16 %v852_v54, %v850_v49 }
 0x1d3   :  { %v915_v22 = vpack.c.bf16 %v853_v55, %v851_v23  ;;  %v701_v25 = vpop.f32.mrb[36].mxu1 }
 0x1d4   :  { %v702_v57 = vadd.f32 %v701_v25, %v2049_v2  ;;  %v703_v58 = vpop.f32.mrb[37].mxu1 }
 0x1d5   :  { %v704_v59 = vadd.f32 %v703_v58, %v2053_v35  ;;  %v705_v60 = vpop.f32.mrb[38].mxu1  ;;  %1113 = vmatprep.mubr.bf16.mxu0 %v915_v22 }
 0x1d6   :  { %v706_v61 = vadd.f32 %v705_v60, %v2049_v2  ;;  %v707_v63 = vpop.f32.mrb[39].mxu1  ;;  %1114 = vmatmul.mubr.bf16.vlgmr.msra.gmra.mrb[32].mxu0 %v914_v56  ;;  %v854_v3 = vmax.f32 %v702_v57, 0.0 }
 0x1d7   :  { %v708_v1 = vadd.f32 %v707_v63, %v2053_v35  ;;  %v855_v5 = vmax.f32 %v704_v59, 0.0 }
 0x1d8   :  { %v856_v4 = vmax.f32 %v706_v61, 0.0 }
 0x1d9   :  { %v857_v7 = vmax.f32 %v708_v1, 0.0 }
 0x1da   :  { %v916_v8 = vpack.c.bf16 %v856_v4, %v854_v3 }
 0x1db   :  { %v917_v11 = vpack.c.bf16 %v857_v7, %v855_v5  ;;  %v711_v12 = vpop.f32.mrb[40].mxu1 }
 0x1dc   :  { %v712_v14 = vadd.f32 %v711_v12, %v2049_v2  ;;  %v713_v15 = vpop.f32.mrb[41].mxu1 }
 0x1dd   :  { %v714_v16 = vadd.f32 %v713_v15, %v2053_v35  ;;  %v715_v17 = vpop.f32.mrb[42].mxu1  ;;  %1121 = vmatprep.mubr.bf16.mxu0 %v917_v11 }
 0x1de   :  { %v716_v0 = vadd.f32 %v715_v17, %v2049_v2  ;;  %v717_v18 = vpop.f32.mrb[43].mxu1  ;;  %1122 = vmatmul.mubr.bf16.gmra.mrb[36].mxu0 %v916_v8  ;;  %v858_v20 = vmax.f32 %v712_v14, 0.0 }
 0x1df   :  { %v718_v19 = vadd.f32 %v717_v18, %v2053_v35  ;;  %v859_v24 = vmax.f32 %v714_v16, 0.0 }
 0x1e0   :  { %v860_v21 = vmax.f32 %v716_v0, 0.0 }
 0x1e1   :  { %v861_v28 = vmax.f32 %v718_v19, 0.0 }
 0x1e2   :  { %v918_v29 = vpack.c.bf16 %v860_v21, %v858_v20 }
 0x1e3   :  { %v919_v30 = vpack.c.bf16 %v861_v28, %v859_v24  ;;  %v721_v31 = vpop.f32.mrb[44].mxu1 }
 0x1e4   :  { %v722_v32 = vadd.f32 %v721_v31, %v2049_v2  ;;  %v723_v33 = vpop.f32.mrb[45].mxu1 }
 0x1e5   :  { %v724_v34 = vadd.f32 %v723_v33, %v2053_v35  ;;  %v725_v36 = vpop.f32.mrb[46].mxu1  ;;  %1129 = vmatprep.mubr.bf16.mxu0 %v919_v30 }
 0x1e6   :  { %v726_v37 = vadd.f32 %v725_v36, %v2049_v2  ;;  %v727_v39 = vpop.f32.mrb[47].mxu1  ;;  %1130 = vmatmul.mubr.bf16.gmra.mrb[40].mxu0 %v918_v29  ;;  %v862_v42 = vmax.f32 %v722_v32, 0.0 }
 0x1e7   :  { %v728_v40 = vadd.f32 %v727_v39, %v2053_v35  ;;  %v863_v45 = vmax.f32 %v724_v34, 0.0 }
 0x1e8   :  { %v864_v43 = vmax.f32 %v726_v37, 0.0 }
 0x1e9   :  { %v865_v47 = vmax.f32 %v728_v40, 0.0 }
 0x1ea   :  { %v920_v48 = vpack.c.bf16 %v864_v43, %v862_v42 }
 0x1eb   :  { %v921_v50 = vpack.c.bf16 %v865_v47, %v863_v45  ;;  %v731_v51 = vpop.f32.mrb[48].mxu1 }
 0x1ec   :  { %v732_v52 = vadd.f32 %v731_v51, %v2049_v2  ;;  %v733_v53 = vpop.f32.mrb[49].mxu1 }
 0x1ed   :  { %v734_v26 = vadd.f32 %v733_v53, %v2053_v35  ;;  %v735_v27 = vpop.f32.mrb[50].mxu1  ;;  %1137 = vmatprep.mubr.bf16.mxu0 %v921_v50 }
 0x1ee   :  { %v736_v62 = vadd.f32 %v735_v27, %v2049_v2  ;;  %v737_v38 = vpop.f32.mrb[51].mxu1  ;;  %1138 = vmatmul.mubr.bf16.gmra.mrb[44].mxu0 %v920_v48  ;;  %v866_v9 = vmax.f32 %v732_v52, 0.0 }
 0x1ef   :  { %v738_v6 = vadd.f32 %v737_v38, %v2053_v35  ;;  %v867_v44 = vmax.f32 %v734_v26, 0.0 }
 0x1f0   :  { %v868_v41 = vmax.f32 %v736_v62, 0.0 }
 0x1f1   :  { %v869_v10 = vmax.f32 %v738_v6, 0.0 }
 0x1f2   :  { %v922_v13 = vpack.c.bf16 %v868_v41, %v866_v9 }
 0x1f3   :  { %v923_v46 = vpack.c.bf16 %v869_v10, %v867_v44  ;;  %v741_v49 = vpop.f32.mrb[52].mxu1 }
 0x1f4   :  { %v742_v54 = vadd.f32 %v741_v49, %v2049_v2  ;;  %v743_v23 = vpop.f32.mrb[53].mxu1 }
 0x1f5   :  { %v744_v55 = vadd.f32 %v743_v23, %v2053_v35  ;;  %v745_v56 = vpop.f32.mrb[54].mxu1  ;;  %1145 = vmatprep.mubr.bf16.mxu0 %v923_v46 }
 0x1f6   :  { %v746_v22 = vadd.f32 %v745_v56, %v2049_v2  ;;  %v747_v25 = vpop.f32.mrb[55].mxu1  ;;  %1146 = vmatmul.mubr.bf16.gmra.mrb[48].mxu0 %v922_v13  ;;  %v870_v58 = vmax.f32 %v742_v54, 0.0 }
 0x1f7   :  { %v748_v57 = vadd.f32 %v747_v25, %v2053_v35  ;;  %v871_v60 = vmax.f32 %v744_v55, 0.0 }
 0x1f8   :  { %v872_v59 = vmax.f32 %v746_v22, 0.0 }
 0x1f9   :  { %v873_v61 = vmax.f32 %v748_v57, 0.0 }
 0x1fa   :  { %v924_v63 = vpack.c.bf16 %v872_v59, %v870_v58 }
 0x1fb   :  { %v925_v1 = vpack.c.bf16 %v873_v61, %v871_v60  ;;  %v751_v3 = vpop.f32.mrb[56].mxu1 }
 0x1fc   :  { %v752_v4 = vadd.f32 %v751_v3, %v2049_v2  ;;  %v753_v5 = vpop.f32.mrb[57].mxu1 }
 0x1fd   :  { %v754_v7 = vadd.f32 %v753_v5, %v2053_v35  ;;  %v755_v8 = vpop.f32.mrb[58].mxu1  ;;  %1153 = vmatprep.mubr.bf16.mxu0 %v925_v1 }
 0x1fe   :  { %v756_v11 = vadd.f32 %v755_v8, %v2049_v2  ;;  %v757_v12 = vpop.f32.mrb[59].mxu1  ;;  %1154 = vmatmul.mubr.bf16.gmra.mrb[52].mxu0 %v924_v63  ;;  %v874_v15 = vmax.f32 %v752_v4, 0.0 }
 0x1ff   :  { %v758_v14 = vadd.f32 %v757_v12, %v2053_v35  ;;  %v875_v17 = vmax.f32 %v754_v7, 0.0 }
 0x200   :  { %v876_v16 = vmax.f32 %v756_v11, 0.0 }
 0x201   :  { %v877_v0 = vmax.f32 %v758_v14, 0.0 }
 0x202   :  { %v926_v18 = vpack.c.bf16 %v876_v16, %v874_v15 }
 0x203   :  { %v927_v19 = vpack.c.bf16 %v877_v0, %v875_v17  ;;  %v761_v20 = vpop.f32.mrb[60].mxu1 }
 0x204   :  { %v762_v21 = vadd.f32 %v761_v20, %v2049_v2  ;;  %v763_v24 = vpop.f32.mrb[61].mxu1 }
 0x205   :  { %v764_v28 = vadd.f32 %v763_v24, %v2053_v35  ;;  %v765_v29 = vpop.f32.mrb[62].mxu1  ;;  %1161 = vmatprep.mubr.bf16.mxu0 %v927_v19 }
 0x206   :  { %v766_v30 = vadd.f32 %v765_v29, %v2049_v2  ;;  %v767_v31 = vpop.f32.mrb[63].mxu1  ;;  %1162 = vmatmul.mubr.bf16.gmra.mrb[56].mxu0 %v926_v18  ;;  %v878_v33 = vmax.f32 %v762_v21, 0.0 }
 0x207   :  { %v768_v32 = vadd.f32 %v767_v31, %v2053_v35  ;;  %v879_v36 = vmax.f32 %v764_v28, 0.0 }
 0x208   :  { %v880_v34 = vmax.f32 %v766_v30, 0.0 }
 0x209   :  { %v881_v37 = vmax.f32 %v768_v32, 0.0 }
 0x20a   :  { %v928_v39 = vpack.c.bf16 %v880_v34, %v878_v33 }
 0x20b   :  { %v929_v40 = vpack.c.bf16 %v881_v37, %v879_v36  ;;  %v771_v42 = vpop.f32.mrb[64].mxu1 }
 0x20c   :  { %v772_v43 = vadd.f32 %v771_v42, %v2049_v2  ;;  %v773_v45 = vpop.f32.mrb[65].mxu1 }
 0x20d   :  { %v774_v47 = vadd.f32 %v773_v45, %v2053_v35  ;;  %v775_v48 = vpop.f32.mrb[66].mxu1  ;;  %1169 = vmatprep.mubr.bf16.mxu0 %v929_v40 }
 0x20e   :  { %v776_v50 = vadd.f32 %v775_v48, %v2049_v2  ;;  %v777_v51 = vpop.f32.mrb[67].mxu1  ;;  %1170 = vmatmul.mubr.bf16.gmra.mrb[60].mxu0 %v928_v39  ;;  %v882_v53 = vmax.f32 %v772_v43, 0.0 }
 0x20f   :  { %v778_v52 = vadd.f32 %v777_v51, %v2053_v35  ;;  %v883_v27 = vmax.f32 %v774_v47, 0.0 }
 0x210   :  { %v884_v26 = vmax.f32 %v776_v50, 0.0 }
 0x211   :  { %v885_v62 = vmax.f32 %v778_v52, 0.0 }
 0x212   :  { %v930_v38 = vpack.c.bf16 %v884_v26, %v882_v53 }
 0x213   :  { %v931_v6 = vpack.c.bf16 %v885_v62, %v883_v27  ;;  %v781_v9 = vpop.f32.mrb[68].mxu1 }
 0x214   :  { %v782_v41 = vadd.f32 %v781_v9, %v2049_v2  ;;  %v783_v44 = vpop.f32.mrb[69].mxu1 }
 0x215   :  { %v784_v10 = vadd.f32 %v783_v44, %v2053_v35  ;;  %v785_v13 = vpop.f32.mrb[70].mxu1  ;;  %1177 = vmatprep.mubr.bf16.mxu0 %v931_v6 }
 0x216   :  { %v786_v46 = vadd.f32 %v785_v13, %v2049_v2  ;;  %v787_v49 = vpop.f32.mrb[71].mxu1  ;;  %1178 = vmatmul.mubr.bf16.gmra.mrb[64].mxu0 %v930_v38  ;;  %v886_v23 = vmax.f32 %v782_v41, 0.0 }
 0x217   :  { %v788_v54 = vadd.f32 %v787_v49, %v2053_v35  ;;  %v887_v56 = vmax.f32 %v784_v10, 0.0 }
 0x218   :  { %v888_v55 = vmax.f32 %v786_v46, 0.0 }
 0x219   :  { %v889_v22 = vmax.f32 %v788_v54, 0.0 }
 0x21a   :  { %v932_v25 = vpack.c.bf16 %v888_v55, %v886_v23 }
 0x21b   :  { %v933_v57 = vpack.c.bf16 %v889_v22, %v887_v56  ;;  %v791_v58 = vpop.f32.mrb[72].mxu1 }
 0x21c   :  { %v792_v59 = vadd.f32 %v791_v58, %v2049_v2  ;;  %v793_v60 = vpop.f32.mrb[73].mxu1 }
 0x21d   :  { %v794_v61 = vadd.f32 %v793_v60, %v2053_v35  ;;  %v795_v63 = vpop.f32.mrb[74].mxu1  ;;  %1185 = vmatprep.mubr.bf16.mxu0 %v933_v57 }
 0x21e   :  { %v796_v1 = vadd.f32 %v795_v63, %v2049_v2  ;;  %v797_v3 = vpop.f32.mrb[75].mxu1  ;;  %1186 = vmatmul.mubr.bf16.gmra.mrb[68].mxu0 %v932_v25  ;;  %v890_v5 = vmax.f32 %v792_v59, 0.0 }
 0x21f   :  { %v798_v4 = vadd.f32 %v797_v3, %v2053_v35  ;;  %v891_v8 = vmax.f32 %v794_v61, 0.0 }
 0x220   :  { %v892_v7 = vmax.f32 %v796_v1, 0.0 }
 0x221   :  { %v893_v11 = vmax.f32 %v798_v4, 0.0 }
 0x222   :  { %v934_v12 = vpack.c.bf16 %v892_v7, %v890_v5 }
 0x223   :  { %v935_v14 = vpack.c.bf16 %v893_v11, %v891_v8  ;;  %v801_v15 = vpop.f32.mrb[76].mxu1 }
 0x224   :  { %v802_v16 = vadd.f32 %v801_v15, %v2049_v2  ;;  %v803_v17 = vpop.f32.mrb[77].mxu1 }
 0x225   :  { %v804_v0 = vadd.f32 %v803_v17, %v2053_v35  ;;  %v805_v18 = vpop.f32.mrb[78].mxu1  ;;  %1193 = vmatprep.mubr.bf16.mxu0 %v935_v14 }
 0x226   :  { %v806_v19 = vadd.f32 %v805_v18, %v2049_v2  ;;  %v807_v20 = vpop.f32.mrb[79].mxu1  ;;  %1194 = vmatmul.mubr.bf16.gmra.mrb[72].mxu0 %v934_v12  ;;  %v894_v24 = vmax.f32 %v802_v16, 0.0 }
 0x227   :  { %v808_v21 = vadd.f32 %v807_v20, %v2053_v35  ;;  %v895_v29 = vmax.f32 %v804_v0, 0.0 }
 0x228   :  { %v896_v28 = vmax.f32 %v806_v19, 0.0 }
 0x229   :  { %v897_v30 = vmax.f32 %v808_v21, 0.0 }
 0x22a   :  { %v936_v31 = vpack.c.bf16 %v896_v28, %v894_v24  ;;  %v2122_v28 = vld [vmem:[%s2206_s6] ss:$0 sm:$0xff] }
 0x22b   :  { %v937_v32 = vpack.c.bf16 %v897_v30, %v895_v29  ;;  %v811_v33 = vpop.f32.mrb[80].mxu1 }
 0x22c   :  { %v812_v34 = vadd.f32 %v811_v33, %v2049_v2  ;;  %v813_v36 = vpop.f32.mrb[81].mxu1 }
 0x22d   :  { %v814_v37 = vadd.f32 %v813_v36, %v2053_v35  ;;  %v815_v39 = vpop.f32.mrb[82].mxu1  ;;  %1201 = vmatprep.mubr.bf16.mxu0 %v937_v32 }
 0x22e   :  { %v816_v40 = vadd.f32 %v815_v39, %v2049_v2  ;;  %v817_v42 = vpop.f32.mrb[83].mxu1  ;;  %1202 = vmatmul.mubr.bf16.gmra.mrb[76].mxu0 %v936_v31  ;;  %v898_v45 = vmax.f32 %v812_v34, 0.0 }
 0x22f   :  { %v818_v43 = vadd.f32 %v817_v42, %v2053_v35  ;;  %v899_v48 = vmax.f32 %v814_v37, 0.0 }
 0x230   :  { %v900_v47 = vmax.f32 %v816_v40, 0.0 }
 0x231   :  { %v901_v50 = vmax.f32 %v818_v43, 0.0 }
 0x232   :  { %v938_v51 = vpack.c.bf16 %v900_v47, %v898_v45 }
 0x233   :  { %v939_v52 = vpack.c.bf16 %v901_v50, %v899_v48  ;;  %v821_v53 = vpop.f32.mrb[84].mxu1 }
 0x234   :  { %v822_v26 = vadd.f32 %v821_v53, %v2049_v2  ;;  %v823_v27 = vpop.f32.mrb[85].mxu1 }
 0x235   :  { %v824_v62 = vadd.f32 %v823_v27, %v2053_v35  ;;  %v825_v38 = vpop.f32.mrb[86].mxu1  ;;  %1209 = vmatprep.mubr.bf16.mxu0 %v939_v52 }
 0x236   :  { %v826_v6 = vadd.f32 %v825_v38, %v2049_v2  ;;  %v827_v9 = vpop.f32.mrb[87].mxu1  ;;  %1210 = vmatmul.mubr.bf16.gmra.mrb[80].mxu0 %v938_v51  ;;  %v902_v44 = vmax.f32 %v822_v26, 0.0 }
 0x237   :  { %v828_v41 = vadd.f32 %v827_v9, %v2053_v35  ;;  %v903_v13 = vmax.f32 %v824_v62, 0.0 }
 0x238   :  { %v904_v10 = vmax.f32 %v826_v6, 0.0 }
 0x239   :  { %v905_v46 = vmax.f32 %v828_v41, 0.0 }
 0x23a   :  { %v940_v49 = vpack.c.bf16 %v904_v10, %v902_v44 }
 0x23b   :  { %v941_v54 = vpack.c.bf16 %v905_v46, %v903_v13  ;;  %v831_v23 = vpop.f32.mrb[88].mxu1 }
 0x23c   :  { %v832_v55 = vadd.f32 %v831_v23, %v2049_v2  ;;  %v833_v56 = vpop.f32.mrb[89].mxu1 }
 0x23d   :  { %v834_v22 = vadd.f32 %v833_v56, %v2053_v35  ;;  %v835_v25 = vpop.f32.mrb[90].mxu1  ;;  %1217 = vmatprep.mubr.bf16.mxu0 %v941_v54 }
 0x23e   :  { %v836_v57 = vadd.f32 %v835_v25, %v2049_v2  ;;  %v837_v58 = vpop.f32.mrb[91].mxu1  ;;  %1218 = vmatmul.mubr.bf16.gmra.mrb[84].mxu0 %v940_v49  ;;  %v906_v60 = vmax.f32 %v832_v55, 0.0 }
 0x23f   :  { %v838_v59 = vadd.f32 %v837_v58, %v2053_v35  ;;  %v907_v63 = vmax.f32 %v834_v22, 0.0 }
 0x240   :  { %v908_v61 = vmax.f32 %v836_v57, 0.0 }
 0x241   :  { %v909_v1 = vmax.f32 %v838_v59, 0.0 }
 0x242   :  { %v942_v3 = vpack.c.bf16 %v908_v61, %v906_v60 }
 0x243   :  { %v943_v4 = vpack.c.bf16 %v909_v1, %v907_v63  ;;  %v841_v5 = vpop.f32.mrb[92].mxu1 }
 0x244   :  { %v842_v7 = vadd.f32 %v841_v5, %v2049_v2  ;;  %v843_v8 = vpop.f32.mrb[93].mxu1 }
 0x245   :  { %v844_v11 = vadd.f32 %v843_v8, %v2053_v35  ;;  %v845_v12 = vpop.f32.mrb[94].mxu1  ;;  %1225 = vmatprep.mubr.bf16.mxu0 %v943_v4 }
 0x246   :  { %v846_v14 = vadd.f32 %v845_v12, %v2049_v2  ;;  %v847_v15 = vpop.f32.mrb[95].mxu1  ;;  %1226 = vmatmul.mubr.bf16.gmra.mrb[88].mxu0 %v942_v3  ;;  %v910_v17 = vmax.f32 %v842_v7, 0.0 }
 0x247   :  { %v848_v16 = vadd.f32 %v847_v15, %v2053_v35  ;;  %v911_v18 = vmax.f32 %v844_v11, 0.0 }
 0x248   :  { %v912_v0 = vmax.f32 %v846_v14, 0.0 }
 0x249   :  { %v913_v19 = vmax.f32 %v848_v16, 0.0 }
 0x24a   :  { %v944_v20 = vpack.c.bf16 %v912_v0, %v910_v17 }
 0x24b   :  { %v945_v21 = vpack.c.bf16 %v913_v19, %v911_v18 }
 0x24d   :  { %1233 = vmatprep.mubr.bf16.mxu0 %v945_v21 }
 0x24e   :  { %1234 = vmatmul.mubr.bf16.gmra.mrb[92].mxu0 %v944_v20 }
 0x2a9   :  { %v1408_v24 = vpop.f32.mrb[32].mxu0 }
 0x2aa   :  { %v1409_v29 = vpop.f32.mrb[33].mxu0 }
 0x2ab   :  { %v1410_v2 = vadd.f32 %v1409_v29, %v1408_v24  ;;  %v1411_v30 = vpop.f32.mrb[34].mxu0 }
 0x2ac   :  { %v1412_v31 = vpop.f32.mrb[35].mxu0 }
 0x2ad   :  { %v1116_v35 = vadd.f32 %v1410_v2, %v2122_v28  ;;  %v1413_v32 = vadd.f32 %v1412_v31, %v1411_v30 }
 0x2af   :  { %1579 = vtanh.f32 %v1116_v35  ;;  %v1119_v33 = vadd.f32 %v1413_v32, %v2122_v28 }
 0x2b1   :  { %1581 = vtanh.f32 %v1119_v33  ;;  %v1414_v34 = vpop.f32.mrb[36].mxu0 }
 0x2b2   :  { %v1415_v36 = vpop.f32.mrb[37].mxu0 }
 0x2b3   :  { %v1416_v37 = vadd.f32 %v1415_v36, %v1414_v34  ;;  %v1417_v39 = vpop.f32.mrb[38].mxu0 }
 0x2b4   :  { %v1418_v40 = vpop.f32.mrb[39].mxu0 }
 0x2b5   :  { %v1124_v42 = vadd.f32 %v1416_v37, %v2122_v28  ;;  %v1419_v43 = vadd.f32 %v1418_v40, %v1417_v39 }
 0x2b7   :  { %1583 = vtanh.f32 %v1124_v42  ;;  %v1127_v45 = vadd.f32 %v1419_v43, %v2122_v28 }
 0x2b9   :  { %v1580_v47 = vpop.eup %1579  ;;  %1585 = vtanh.f32 %v1127_v45  ;;  %v1420_v48 = vpop.f32.mrb[40].mxu0 }
 0x2ba   :  { %1275 = vst.msk [vmem:[#allocation5] sm:$0xff] %vm1274_vm2, %v1580_v47  ;;  %v1421_v50 = vpop.f32.mrb[41].mxu0 }
 0x2bb   :  { %v1582_v51 = vpop.eup %1581  ;;  %v1422_v52 = vadd.f32 %v1421_v50, %v1420_v48  ;;  %v1423_v53 = vpop.f32.mrb[42].mxu0 }
 0x2bc   :  { %1276 = vst.msk [vmem:[#allocation5 + $0x8] sm:$0xff] %vm1274_vm2, %v1582_v51  ;;  %v1424_v26 = vpop.f32.mrb[43].mxu0 }
 0x2bd   :  { %v1132_v27 = vadd.f32 %v1422_v52, %v2122_v28  ;;  %v1425_v62 = vadd.f32 %v1424_v26, %v1423_v53 }
 0x2bf   :  { %1587 = vtanh.f32 %v1132_v27  ;;  %v1135_v38 = vadd.f32 %v1425_v62, %v2122_v28 }
 0x2c1   :  { %v1584_v6 = vpop.eup %1583  ;;  %1589 = vtanh.f32 %v1135_v38  ;;  %v1426_v9 = vpop.f32.mrb[44].mxu0 }
 0x2c2   :  { %1277 = vst.msk [vmem:[#allocation5 + $0x10] sm:$0xff] %vm1274_vm2, %v1584_v6  ;;  %v1427_v41 = vpop.f32.mrb[45].mxu0 }
 0x2c3   :  { %v1586_v44 = vpop.eup %1585  ;;  %v1428_v10 = vadd.f32 %v1427_v41, %v1426_v9  ;;  %v1429_v13 = vpop.f32.mrb[46].mxu0 }
 0x2c4   :  { %1278 = vst.msk [vmem:[#allocation5 + $0x18] sm:$0xff] %vm1274_vm2, %v1586_v44  ;;  %v1430_v46 = vpop.f32.mrb[47].mxu0 }
 0x2c5   :  { %v1140_v49 = vadd.f32 %v1428_v10, %v2122_v28  ;;  %v1431_v54 = vadd.f32 %v1430_v46, %v1429_v13 }
 0x2c7   :  { %1591 = vtanh.f32 %v1140_v49  ;;  %v1143_v23 = vadd.f32 %v1431_v54, %v2122_v28 }
 0x2c9   :  { %v1588_v55 = vpop.eup %1587  ;;  %1593 = vtanh.f32 %v1143_v23  ;;  %v1432_v56 = vpop.f32.mrb[48].mxu0 }
 0x2ca   :  { %1279 = vst.msk [vmem:[#allocation5 + $0x20] sm:$0xff] %vm1274_vm2, %v1588_v55  ;;  %v1433_v22 = vpop.f32.mrb[49].mxu0 }
 0x2cb   :  { %v1590_v25 = vpop.eup %1589  ;;  %v1434_v57 = vadd.f32 %v1433_v22, %v1432_v56  ;;  %v1435_v58 = vpop.f32.mrb[50].mxu0 }
 0x2cc   :  { %1280 = vst.msk [vmem:[#allocation5 + $0x28] sm:$0xff] %vm1274_vm2, %v1590_v25  ;;  %v1436_v59 = vpop.f32.mrb[51].mxu0 }
 0x2cd   :  { %v1148_v60 = vadd.f32 %v1434_v57, %v2122_v28  ;;  %v1437_v61 = vadd.f32 %v1436_v59, %v1435_v58 }
 0x2cf   :  { %1595 = vtanh.f32 %v1148_v60  ;;  %v1151_v63 = vadd.f32 %v1437_v61, %v2122_v28 }
 0x2d1   :  { %v1592_v1 = vpop.eup %1591  ;;  %1597 = vtanh.f32 %v1151_v63  ;;  %v1438_v3 = vpop.f32.mrb[52].mxu0 }
 0x2d2   :  { %1281 = vst.msk [vmem:[#allocation5 + $0x30] sm:$0xff] %vm1274_vm2, %v1592_v1  ;;  %v1439_v4 = vpop.f32.mrb[53].mxu0 }
 0x2d3   :  { %v1594_v5 = vpop.eup %1593  ;;  %v1440_v7 = vadd.f32 %v1439_v4, %v1438_v3  ;;  %v1441_v8 = vpop.f32.mrb[54].mxu0 }
 0x2d4   :  { %1282 = vst.msk [vmem:[#allocation5 + $0x38] sm:$0xff] %vm1274_vm2, %v1594_v5  ;;  %v1442_v11 = vpop.f32.mrb[55].mxu0 }
 0x2d5   :  { %v1156_v12 = vadd.f32 %v1440_v7, %v2122_v28  ;;  %v1443_v14 = vadd.f32 %v1442_v11, %v1441_v8 }
 0x2d7   :  { %1599 = vtanh.f32 %v1156_v12  ;;  %v1159_v15 = vadd.f32 %v1443_v14, %v2122_v28 }
 0x2d9   :  { %v1596_v16 = vpop.eup %1595  ;;  %1601 = vtanh.f32 %v1159_v15  ;;  %v1444_v17 = vpop.f32.mrb[56].mxu0 }
 0x2da   :  { %1283 = vst.msk [vmem:[#allocation5 + $0x40] sm:$0xff] %vm1274_vm2, %v1596_v16  ;;  %v1445_v0 = vpop.f32.mrb[57].mxu0 }
 0x2db   :  { %v1598_v18 = vpop.eup %1597  ;;  %v1446_v19 = vadd.f32 %v1445_v0, %v1444_v17  ;;  %v1447_v20 = vpop.f32.mrb[58].mxu0 }
 0x2dc   :  { %1284 = vst.msk [vmem:[#allocation5 + $0x48] sm:$0xff] %vm1274_vm2, %v1598_v18  ;;  %v1448_v21 = vpop.f32.mrb[59].mxu0 }
 0x2dd   :  { %v1164_v24 = vadd.f32 %v1446_v19, %v2122_v28  ;;  %v1449_v29 = vadd.f32 %v1448_v21, %v1447_v20 }
 0x2df   :  { %1603 = vtanh.f32 %v1164_v24  ;;  %v1167_v2 = vadd.f32 %v1449_v29, %v2122_v28 }
 0x2e1   :  { %v1600_v30 = vpop.eup %1599  ;;  %1605 = vtanh.f32 %v1167_v2  ;;  %v1450_v31 = vpop.f32.mrb[60].mxu0 }
 0x2e2   :  { %1285 = vst.msk [vmem:[#allocation5 + $0x50] sm:$0xff] %vm1274_vm2, %v1600_v30  ;;  %v1451_v35 = vpop.f32.mrb[61].mxu0 }
 0x2e3   :  { %v1602_v32 = vpop.eup %1601  ;;  %v1452_v33 = vadd.f32 %v1451_v35, %v1450_v31  ;;  %v1453_v34 = vpop.f32.mrb[62].mxu0 }
 0x2e4   :  { %1286 = vst.msk [vmem:[#allocation5 + $0x58] sm:$0xff] %vm1274_vm2, %v1602_v32  ;;  %v1454_v36 = vpop.f32.mrb[63].mxu0 }
 0x2e5   :  { %v1172_v37 = vadd.f32 %v1452_v33, %v2122_v28  ;;  %v1455_v39 = vadd.f32 %v1454_v36, %v1453_v34 }
 0x2e7   :  { %1607 = vtanh.f32 %v1172_v37  ;;  %v1175_v40 = vadd.f32 %v1455_v39, %v2122_v28 }
 0x2e9   :  { %v1604_v42 = vpop.eup %1603  ;;  %1609 = vtanh.f32 %v1175_v40  ;;  %v1456_v43 = vpop.f32.mrb[64].mxu0 }
 0x2ea   :  { %1287 = vst.msk [vmem:[#allocation5 + $0x60] sm:$0xff] %vm1274_vm2, %v1604_v42  ;;  %v1457_v45 = vpop.f32.mrb[65].mxu0 }
 0x2eb   :  { %v1606_v47 = vpop.eup %1605  ;;  %v1458_v48 = vadd.f32 %v1457_v45, %v1456_v43  ;;  %v1459_v50 = vpop.f32.mrb[66].mxu0 }
 0x2ec   :  { %1288 = vst.msk [vmem:[#allocation5 + $0x68] sm:$0xff] %vm1274_vm2, %v1606_v47  ;;  %v1460_v51 = vpop.f32.mrb[67].mxu0 }
 0x2ed   :  { %v1180_v52 = vadd.f32 %v1458_v48, %v2122_v28  ;;  %v1461_v53 = vadd.f32 %v1460_v51, %v1459_v50 }
 0x2ef   :  { %1611 = vtanh.f32 %v1180_v52  ;;  %v1183_v26 = vadd.f32 %v1461_v53, %v2122_v28 }
 0x2f1   :  { %v1608_v27 = vpop.eup %1607  ;;  %1613 = vtanh.f32 %v1183_v26  ;;  %v1462_v62 = vpop.f32.mrb[68].mxu0 }
 0x2f2   :  { %1289 = vst.msk [vmem:[#allocation5 + $0x70] sm:$0xff] %vm1274_vm2, %v1608_v27  ;;  %v1463_v38 = vpop.f32.mrb[69].mxu0 }
 0x2f3   :  { %v1610_v6 = vpop.eup %1609  ;;  %v1464_v9 = vadd.f32 %v1463_v38, %v1462_v62  ;;  %v1465_v41 = vpop.f32.mrb[70].mxu0 }
 0x2f4   :  { %1290 = vst.msk [vmem:[#allocation5 + $0x78] sm:$0xff] %vm1274_vm2, %v1610_v6  ;;  %v1466_v44 = vpop.f32.mrb[71].mxu0 }
 0x2f5   :  { %v1188_v10 = vadd.f32 %v1464_v9, %v2122_v28  ;;  %v1467_v13 = vadd.f32 %v1466_v44, %v1465_v41 }
 0x2f7   :  { %1615 = vtanh.f32 %v1188_v10  ;;  %v1191_v46 = vadd.f32 %v1467_v13, %v2122_v28 }
 0x2f9   :  { %v1612_v49 = vpop.eup %1611  ;;  %1617 = vtanh.f32 %v1191_v46  ;;  %v1468_v54 = vpop.f32.mrb[72].mxu0 }
 0x2fa   :  { %1291 = vst.msk [vmem:[#allocation5 + $0x80] sm:$0xff] %vm1274_vm2, %v1612_v49  ;;  %v1469_v23 = vpop.f32.mrb[73].mxu0 }
 0x2fb   :  { %v1614_v55 = vpop.eup %1613  ;;  %v1470_v56 = vadd.f32 %v1469_v23, %v1468_v54  ;;  %v1471_v22 = vpop.f32.mrb[74].mxu0 }
 0x2fc   :  { %1292 = vst.msk [vmem:[#allocation5 + $0x88] sm:$0xff] %vm1274_vm2, %v1614_v55  ;;  %v1472_v25 = vpop.f32.mrb[75].mxu0 }
 0x2fd   :  { %v1196_v57 = vadd.f32 %v1470_v56, %v2122_v28  ;;  %v1473_v58 = vadd.f32 %v1472_v25, %v1471_v22 }
 0x2ff   :  { %1619 = vtanh.f32 %v1196_v57  ;;  %v1199_v59 = vadd.f32 %v1473_v58, %v2122_v28 }
 0x301   :  { %v1616_v60 = vpop.eup %1615  ;;  %1621 = vtanh.f32 %v1199_v59  ;;  %v1474_v61 = vpop.f32.mrb[76].mxu0 }
 0x302   :  { %1293 = vst.msk [vmem:[#allocation5 + $0x90] sm:$0xff] %vm1274_vm2, %v1616_v60  ;;  %v1475_v63 = vpop.f32.mrb[77].mxu0 }
 0x303   :  { %v1618_v1 = vpop.eup %1617  ;;  %v1476_v3 = vadd.f32 %v1475_v63, %v1474_v61  ;;  %v1477_v4 = vpop.f32.mrb[78].mxu0 }
 0x304   :  { %1294 = vst.msk [vmem:[#allocation5 + $0x98] sm:$0xff] %vm1274_vm2, %v1618_v1  ;;  %v1478_v5 = vpop.f32.mrb[79].mxu0 }
 0x305   :  { %v1204_v7 = vadd.f32 %v1476_v3, %v2122_v28  ;;  %v1479_v8 = vadd.f32 %v1478_v5, %v1477_v4 }
 0x307   :  { %1623 = vtanh.f32 %v1204_v7  ;;  %v1207_v11 = vadd.f32 %v1479_v8, %v2122_v28 }
 0x309   :  { %v1620_v12 = vpop.eup %1619  ;;  %1625 = vtanh.f32 %v1207_v11  ;;  %v1480_v14 = vpop.f32.mrb[80].mxu0 }
 0x30a   :  { %1295 = vst.msk [vmem:[#allocation5 + $0xa0] sm:$0xff] %vm1274_vm2, %v1620_v12  ;;  %v1481_v15 = vpop.f32.mrb[81].mxu0 }
 0x30b   :  { %v1622_v16 = vpop.eup %1621  ;;  %v1482_v17 = vadd.f32 %v1481_v15, %v1480_v14  ;;  %v1483_v0 = vpop.f32.mrb[82].mxu0 }
 0x30c   :  { %1296 = vst.msk [vmem:[#allocation5 + $0xa8] sm:$0xff] %vm1274_vm2, %v1622_v16  ;;  %v1484_v18 = vpop.f32.mrb[83].mxu0 }
 0x30d   :  { %v1212_v19 = vadd.f32 %v1482_v17, %v2122_v28  ;;  %v1485_v20 = vadd.f32 %v1484_v18, %v1483_v0 }
 0x30f   :  { %1627 = vtanh.f32 %v1212_v19  ;;  %v1215_v21 = vadd.f32 %v1485_v20, %v2122_v28 }
 0x311   :  { %v1624_v24 = vpop.eup %1623  ;;  %1629 = vtanh.f32 %v1215_v21  ;;  %v1486_v29 = vpop.f32.mrb[84].mxu0 }
 0x312   :  { %1297 = vst.msk [vmem:[#allocation5 + $0xb0] sm:$0xff] %vm1274_vm2, %v1624_v24  ;;  %v1487_v2 = vpop.f32.mrb[85].mxu0 }
 0x313   :  { %v1626_v30 = vpop.eup %1625  ;;  %v1488_v31 = vadd.f32 %v1487_v2, %v1486_v29  ;;  %v1489_v35 = vpop.f32.mrb[86].mxu0 }
 0x314   :  { %1298 = vst.msk [vmem:[#allocation5 + $0xb8] sm:$0xff] %vm1274_vm2, %v1626_v30  ;;  %v1490_v32 = vpop.f32.mrb[87].mxu0 }
 0x315   :  { %v1220_v33 = vadd.f32 %v1488_v31, %v2122_v28  ;;  %v1491_v34 = vadd.f32 %v1490_v32, %v1489_v35 }
 0x317   :  { %1631 = vtanh.f32 %v1220_v33  ;;  %v1223_v36 = vadd.f32 %v1491_v34, %v2122_v28 }
 0x319   :  { %v1628_v37 = vpop.eup %1627  ;;  %1633 = vtanh.f32 %v1223_v36  ;;  %v1492_v39 = vpop.f32.mrb[88].mxu0 }
 0x31a   :  { %1299 = vst.msk [vmem:[#allocation5 + $0xc0] sm:$0xff] %vm1274_vm2, %v1628_v37  ;;  %v1493_v40 = vpop.f32.mrb[89].mxu0 }
 0x31b   :  { %v1630_v42 = vpop.eup %1629  ;;  %v1494_v43 = vadd.f32 %v1493_v40, %v1492_v39  ;;  %v1495_v45 = vpop.f32.mrb[90].mxu0 }
 0x31c   :  { %1300 = vst.msk [vmem:[#allocation5 + $0xc8] sm:$0xff] %vm1274_vm2, %v1630_v42  ;;  %v1496_v47 = vpop.f32.mrb[91].mxu0 }
 0x31d   :  { %v1228_v48 = vadd.f32 %v1494_v43, %v2122_v28  ;;  %v1497_v50 = vadd.f32 %v1496_v47, %v1495_v45 }
 0x31f   :  { %1635 = vtanh.f32 %v1228_v48  ;;  %v1231_v51 = vadd.f32 %v1497_v50, %v2122_v28 }
 0x321   :  { %v1632_v52 = vpop.eup %1631  ;;  %1637 = vtanh.f32 %v1231_v51  ;;  %v1498_v53 = vpop.f32.mrb[92].mxu0 }
 0x322   :  { %1301 = vst.msk [vmem:[#allocation5 + $0xd0] sm:$0xff] %vm1274_vm2, %v1632_v52  ;;  %v1499_v26 = vpop.f32.mrb[93].mxu0 }
 0x323   :  { %v1634_v27 = vpop.eup %1633  ;;  %v1500_v62 = vadd.f32 %v1499_v26, %v1498_v53  ;;  %v1501_v38 = vpop.f32.mrb[94].mxu0 }
 0x324   :  { %1302 = vst.msk [vmem:[#allocation5 + $0xd8] sm:$0xff] %vm1274_vm2, %v1634_v27  ;;  %v1502_v6 = vpop.f32.mrb[95].mxu0 }
 0x325   :  { %v1236_v9 = vadd.f32 %v1500_v62, %v2122_v28  ;;  %v1503_v41 = vadd.f32 %v1502_v6, %v1501_v38 }
 0x327   :  { %1639 = vtanh.f32 %v1236_v9  ;;  %v1239_v44 = vadd.f32 %v1503_v41, %v2122_v28 }
 0x329   :  { %v1636_v10 = vpop.eup %1635  ;;  %1641 = vtanh.f32 %v1239_v44 }
 0x32a   :  { %1303 = vst.msk [vmem:[#allocation5 + $0xe0] sm:$0xff] %vm1274_vm2, %v1636_v10 }
 0x32b   :  { %v1638_v13 = vpop.eup %1637 }
 0x32c   :  { %1304 = vst.msk [vmem:[#allocation5 + $0xe8] sm:$0xff] %vm1274_vm2, %v1638_v13 }
 0x331   :  { %v1640_v46 = vpop.eup %1639 }
 0x332   :  { %1305 = vst.msk [vmem:[#allocation5 + $0xf0] sm:$0xff] %vm1274_vm2, %v1640_v46 }
 0x333   :  { %v1642_v49 = vpop.eup %1641 }
 0x334   :  { %1306 = vst.msk [vmem:[#allocation5 + $0xf8] sm:$0xff] %vm1274_vm2, %v1642_v49 }
 0x335   :  { %1311 = vsyncadd [#allocation4], 4064  ;;  %s1695_s6 = smov [#allocation5]  }
 0x336   :  { %s1312_s13 = sshll.u32 %s1695_s6, 4  ;;  %s1313_s13 = int_to_ptr.vmem [resolvable:$true] %s1312_s13 }
 0x337   :  { %s1665_s14 = scalar_lea.vmem %s1313_s13, 32  ;;  %s1669_s15 = scalar_lea.vmem %s1313_s13, 4096 }
 0x338   :  { %p1666_p8 = scmp.ne.s32.totalorder %s1313_s13, %s1665_s14  ;;  %p1670_p9 = scmp.lt.s32.totalorder %s1313_s13, %s1313_s13 }
 0x339   :  { %p1671_p10 = scmp.lt.s32.totalorder %s1669_s15, %s1665_s14 }
 0x33b   :  { %p1672_p11 = por %p1671_p10, %p1670_p9 }
 0x33d   :  { %p1673_p12 = pnand %p1672_p11, %p1666_p8 }
 0x33f   :  { %1676 = shalt.err (!%p1673_p12)
}
 0x340   :  { %s1677_s18 = scalar_lea.hbm %s2207_s7, 32 }
 0x341   :  { %p1678_p13 = scmp.ne.s32.totalorder %s2207_s7, %s1677_s18  ;;  %p1681_p0 = scmp.lt.u32.totalorder %s1677_s18, %s2207_s7 }
 0x343   :  { %p1683_p1 = pnand %p1681_p0, %p1678_p13 }
 0x345   :  { %1686 = shalt.err (!%p1683_p1)
}
 0x346   :  { %s1696_s21 = smov 32   ;;  %s1697_s22 = smov 2  }
 0x347   :  { %1318 = dma.vmem_to_hbm [thread:$0]  %s1313_s13, 32, %s2207_s7, [#allocation4], %s1696_s21, %s1696_s21, %s1697_s22  }
 0x348   :  { %1689 = dma.done.wait [#allocation4], 4096  }
 0x349   :  { %1690 = vsyncadd [#allocation4], 4294963200 }
 0x34a   :  { %1322 = vsyncpa [#allocation3], 1 }
 0x34b   :  { %1323 = vsyncpa [#allocation4], 1 }

</bundles_post_ra>
